<compile_context>
chip_gen: v6e
topology: v6e:2x2x1
jax: 0.10.0
libtpu: 0.0.40
codegen_flags: <defaults>
</compile_context>

<pallas_src>
import functools

import jax
import jax.numpy as jnp
from jax.experimental import pallas as pl
from jax.experimental.pallas import tpu as pltpu

_MIB = 1024 * 1024


def _round_up(x, m):
    return ((x + m - 1) // m) * m


def _physical_vmem_bytes():
    try:
        info = pltpu.get_tpu_info()
        v = getattr(info, "vmem_capacity_bytes", None)
        if v:
            return int(v)
    except Exception:
        pass
    return 64 * _MIB  # conservative default (v7x per-core VMEM)


def _vmem_budget_bytes():
    # ~100 MiB on v5e/v6e (128 MiB physical), ~56 MiB on v7x (64 MiB physical).
    return min(_physical_vmem_bytes() - 8 * _MIB, 100 * _MIB)


def _vmem_footprint_bytes(tile_l, pad_al, cpi, cpo, K, has_ds, out_bytes,
                          weight_bufs):
    act = 2 * tile_l * cpi * 2                 # input tile, double-buffered bf16
    out = 2 * tile_l * cpo * out_bytes         # output tile, double-buffered
    w = K * cpi * cpo * 2 + K * cpo * cpo * 2 + 2 * cpo * 4
    if has_ds:
        w += cpi * cpo * 2 + cpo * 4
    w *= weight_bufs
    scr = (pad_al + tile_l) * (cpi + cpo) * 2  # halo scratch, bf16
    return act + out + w + scr


def _pick_tile_l(L, padding, cpi, cpo, K, has_ds, out_bytes, budget):
    """Largest L-tile (multiple of 16, >= padding, cap 1024) fitting the budget."""
    pad_al = _round_up(padding, 16) if padding else 0
    cap = min(L, 1024)
    for cand in range(cap, 0, -1):
        if L % cand:
            continue
        if cand != L and (cand % 16 or cand < padding):
            continue
        fp = _vmem_footprint_bytes(cand, pad_al, cpi, cpo, K, has_ds, out_bytes,
                                   weight_bufs=1)
        if fp <= budget:
            return cand
    return L


def _temporal_block_kernel(
    x_ref,      # (1, TL, Cpi)   bf16  current L-tile of the input (NLC)
    w1_ref,     # (K*Cpi, Cpo)   bf16  conv1 weight, tap-major layout
    b1_ref,     # (1, Cpo)       f32
    w2_ref,     # (K*Cpo, Cpo)   bf16  conv2 weight
    b2_ref,     # (1, Cpo)       f32
    *rest,      # [wd_ref (Cpi,Cpo) bf16, bd_ref (1,Cpo) f32]?, o_ref, x_buf, h_buf
    tl, pad, pad_al, dilation, K, has_downsample, multi_tile, fuse_taps,
):
    if has_downsample:
        wd_ref, bd_ref, o_ref, x_buf, h_buf = rest
    else:
        o_ref, x_buf, h_buf = rest

    j = pl.program_id(1)  # L-tile index (innermost grid axis)

    # Zero the causal halo at the start of each batch element.
    if pad > 0:
        @pl.when(j == 0)
        def _():
            x_buf[pad_al - pad:pad_al, :] = jnp.zeros(
                (pad, x_buf.shape[1]), x_buf.dtype)
            h_buf[pad_al - pad:pad_al, :] = jnp.zeros(
                (pad, h_buf.shape[1]), h_buf.dtype)

    # Stage this tile's input at the sublane-aligned offset, behind the halo.
    x_now = x_ref[0]                                      # (TL, Cpi) bf16
    if pad > 0:
        x_buf[pad_al:pad_al + tl, :] = x_now

    def causal_conv(cur, buf, w_ref, b_ref):
        """Causal dilated conv + chomp + bias + ReLU on one L-tile."""
        cin_p = buf.shape[1]
        if fuse_taps and K > 1:
            # Fused im2col: one (TL, K*C) @ (K*C, Cpo) matmul.
            taps = []
            for k in range(K):
                off = k * dilation
                taps.append(cur if off == pad else
                            buf[pad_al - pad + off:pad_al - pad + off + tl, :])
            acc = jnp.dot(jnp.concatenate(taps, axis=1), w_ref[...],
                          preferred_element_type=jnp.float32)
        else:
            # K accumulating matmuls: no (TL, K*C) temp / misaligned copies.
            acc = jnp.dot(cur, w_ref[(K - 1) * cin_p:K * cin_p, :],
                          preferred_element_type=jnp.float32)
            for k in range(K - 1):
                st = pad_al - pad + k * dilation
                acc += jnp.dot(buf[st:st + tl, :],
                               w_ref[k * cin_p:(k + 1) * cin_p, :],
                               preferred_element_type=jnp.float32)
        return jnp.maximum(acc + b_ref[...], 0.0)         # (TL, Cpo) f32

    # conv1 -> relu ; stage bf16 activations for conv2's halo.
    h = causal_conv(x_now, x_buf, w1_ref, b1_ref)
    h_bf = h.astype(jnp.bfloat16)
    if pad > 0:
        h_buf[pad_al:pad_al + tl, :] = h_bf

    # conv2 -> relu.
    out = causal_conv(h_bf, h_buf, w2_ref, b2_ref)

    # Residual: 1x1 conv when Cin != Cout, otherwise a plain add.
    if has_downsample:
        res = jnp.dot(x_now, wd_ref[...],
                      preferred_element_type=jnp.float32) + bd_ref[...]
    else:
        res = x_now.astype(jnp.float32)                   # Cpi == Cpo here

    o_ref[0] = jnp.maximum(out + res, 0.0).astype(o_ref.dtype)

    # Carry the last `pad` rows of x and h into the halo for the next tile.
    # Skipped on the last tile (next batch element re-zeros it anyway) and
    # skipped entirely in the single-tile case.
    if pad > 0 and multi_tile:
        @pl.when(j < pl.num_programs(1) - 1)
        def _():
            x_buf[pad_al - pad:pad_al, :] = x_buf[pad_al + tl - pad:pad_al + tl, :]
            h_buf[pad_al - pad:pad_al, :] = h_buf[pad_al + tl - pad:pad_al + tl, :]


def _weight_norm_eff(v, g):
    """weight_norm reparam: w = g * v / ||v||, norm over (in, k) per out-chan."""
    norm = jnp.sqrt(jnp.sum(v * v, axis=(1, 2), keepdims=True))
    return g[:, None, None] * v / norm


def pack_temporal_block_params(params, kernel_size):
    """Materialize weight-normed, channel-padded, tap-major bf16 weights once."""
    K = kernel_size
    cout, cin, _ = params["w1"].shape
    cpi, cpo = _round_up(cin, 128), _round_up(cout, 128)
    has_downsample = params["wd"] is not None
    if not has_downsample:
        assert cin == cout

    w1_eff = _weight_norm_eff(params["w1"], params["g1"])       # (Cout, Cin, K)
    w2_eff = _weight_norm_eff(params["w2"], params["g2"])       # (Cout, Cout, K)

    def pack_conv(w_eff, cin_p, cout_p):
        w = jnp.transpose(w_eff, (2, 1, 0))                     # (K, Cin, Cout)
        w = jnp.pad(w, ((0, 0),
                        (0, cin_p - w.shape[1]),
                        (0, cout_p - w.shape[2])))
        return w.reshape(K * cin_p, cout_p).astype(jnp.bfloat16)

    packed = dict(
        kernel_size=K, cin=cin, cout=cout, cpi=cpi, cpo=cpo,
        has_downsample=has_downsample,
        w1=pack_conv(w1_eff, cpi, cpo),
        w2=pack_conv(w2_eff, cpo, cpo),
        b1=jnp.pad(params["b1"], (0, cpo - cout)).reshape(1, cpo).astype(jnp.float32),
        b2=jnp.pad(params["b2"], (0, cpo - cout)).reshape(1, cpo).astype(jnp.float32),
    )
    if has_downsample:
        wd = jnp.transpose(params["wd"][:, :, 0], (1, 0))       # (Cin, Cout)
        packed["wd"] = jnp.pad(wd, ((0, cpi - cin), (0, cpo - cout))).astype(jnp.bfloat16)
        packed["bd"] = jnp.pad(params["bd"], (0, cpo - cout)).reshape(1, cpo).astype(jnp.float32)
    return packed


def temporal_block_apply_nlc(x_nlc, packed, *, dilation, padding, tile_l=None,
                             out_dtype=jnp.float32, fuse_taps=False):
    """Channels-last entry point for chaining stacked blocks without transposes.

    x_nlc: (N, L, Cpi) with channels already zero-padded to packed['cpi'].
    Returns (N, L, Cpo) in out_dtype (channels padded to packed['cpo']).
    """
    K = packed["kernel_size"]
    cpi, cpo = packed["cpi"], packed["cpo"]
    has_downsample = packed["has_downsample"]
    n, L, cpi_in = x_nlc.shape
    assert cpi_in == cpi, (cpi_in, cpi)
    # Chomp-based causal semantics are only consistent with full causal padding.
    assert padding == (K - 1) * dilation, "require padding == (K-1)*dilation"

    x_nlc = x_nlc.astype(jnp.bfloat16)
    out_bytes = jnp.dtype(out_dtype).itemsize
    budget = _vmem_budget_bytes()

    if tile_l is None:
        tile_l = _pick_tile_l(L, padding, cpi, cpo, K, has_downsample,
                              out_bytes, budget)
    assert L % tile_l == 0
    num_tiles = L // tile_l
    if num_tiles > 1:
        assert tile_l >= padding and tile_l % 8 == 0

    pad_al = _round_up(padding, 16) if padding else 0
    fp_cons = _vmem_footprint_bytes(tile_l, pad_al, cpi, cpo, K, has_downsample,
                                    out_bytes, weight_bufs=2)
    vmem_limit = int(min(budget, max(fp_cons + 8 * _MIB, 32 * _MIB)))

    kernel = functools.partial(
        _temporal_block_kernel, tl=tile_l, pad=padding, pad_al=pad_al,
        dilation=dilation, K=K, has_downsample=has_downsample,
        multi_tile=num_tiles > 1, fuse_taps=fuse_taps)

    def _run(weight_pm):
        def cspec(shape):
            nd = len(shape)
            kwargs = {} if weight_pm is None else {"pipeline_mode": weight_pm}
            return pl.BlockSpec(shape, lambda b, j, nd=nd: (0,) * nd, **kwargs)

        in_specs = [
            pl.BlockSpec((1, tile_l, cpi), lambda b, j: (b, j, 0)),
            cspec((K * cpi, cpo)), cspec((1, cpo)),
            cspec((K * cpo, cpo)), cspec((1, cpo)),
        ]
        args = [x_nlc, packed["w1"], packed["b1"], packed["w2"], packed["b2"]]
        if has_downsample:
            in_specs += [cspec((cpi, cpo)), cspec((1, cpo))]
            args += [packed["wd"], packed["bd"]]

        return pl.pallas_call(
            kernel,
            out_shape=jax.ShapeDtypeStruct((n, L, cpo), out_dtype),
            grid_spec=pltpu.PrefetchScalarGridSpec(
                num_scalar_prefetch=0,
                grid=(n, num_tiles),
                in_specs=in_specs,
                out_specs=pl.BlockSpec((1, tile_l, cpo), lambda b, j: (b, j, 0)),
                scratch_shapes=[
                    pltpu.VMEM((pad_al + tile_l, cpi), jnp.bfloat16),
                    pltpu.VMEM((pad_al + tile_l, cpo), jnp.bfloat16),
                ],
            ),
            compiler_params=pltpu.CompilerParams(
                dimension_semantics=("parallel", "arbitrary"),
                vmem_limit_bytes=vmem_limit),
        )(*args)

    # Single-buffer the constant weight/bias operands (their block index never
    # changes); fall back to default double-buffering if unsupported.
    try:
        return _run(pl.Buffered(1))
    except Exception:
        return _run(None)


def temporal_block_forward(x_ncl, params, *, kernel_size, dilation, padding,
                           tile_l=None, out_dtype=jnp.float32, fuse_taps=False):
    """PyTorch-layout boundary wrapper: x_ncl (N, Cin, L) -> (N, Cout, L).

    For stacked blocks, call pack_temporal_block_params once per block and
    chain temporal_block_apply_nlc in NLC layout to avoid per-block transposes.
    """
    packed = pack_temporal_block_params(params, kernel_size)
    n, cin, L = x_ncl.shape
    assert cin == packed["cin"]
    x_nlc = jnp.transpose(x_ncl, (0, 2, 1))
    x_nlc = jnp.pad(x_nlc, ((0, 0), (0, 0), (0, packed["cpi"] - cin)))
    out_nlc = temporal_block_apply_nlc(
        x_nlc, packed, dilation=dilation, padding=padding, tile_l=tile_l,
        out_dtype=out_dtype, fuse_taps=fuse_taps)
    return jnp.transpose(out_nlc[:, :, :packed["cout"]], (0, 2, 1)).astype(x_ncl.dtype)


def reference_forward(x_ncl, params, *, kernel_size, dilation, padding):
    """Pure-JAX f32 reference (conv + chomp == left-pad-only causal conv)."""
    w1 = _weight_norm_eff(params["w1"], params["g1"])
    w2 = _weight_norm_eff(params["w2"], params["g2"])

    def conv(x, w, b):
        out = jax.lax.conv_general_dilated(
            x, w, window_strides=(1,), padding=[(padding, 0)],
            rhs_dilation=(dilation,), dimension_numbers=("NCH", "OIH", "NCH"))
        return out + b[None, :, None]

    h = jax.nn.relu(conv(x_ncl, w1, params["b1"]))
    out = jax.nn.relu(conv(h, w2, params["b2"]))
    if params["wd"] is None:
        res = x_ncl
    else:
        res = jax.lax.conv_general_dilated(
            x_ncl, params["wd"], window_strides=(1,), padding=[(0, 0)],
            dimension_numbers=("NCH", "OIH", "NCH")) + params["bd"][None, :, None]
    return jax.nn.relu(out + res)


def init_params(key, n_inputs, n_outputs, kernel_size):
    """Deterministic synthetic parameters mirroring the module's shapes."""
    ks = jax.random.split(key, 8)
    v1 = 0.01 * jax.random.normal(ks[0], (n_outputs, n_inputs, kernel_size), jnp.float32)
    v2 = 0.01 * jax.random.normal(ks[1], (n_outputs, n_outputs, kernel_size), jnp.float32)
    g1 = jnp.sqrt(jnp.sum(v1 * v1, axis=(1, 2)))
    g2 = jnp.sqrt(jnp.sum(v2 * v2, axis=(1, 2)))
    b1 = 0.01 * jax.random.normal(ks[2], (n_outputs,), jnp.float32)
    b2 = 0.01 * jax.random.normal(ks[3], (n_outputs,), jnp.float32)
    if n_inputs != n_outputs:
        wd = 0.01 * jax.random.normal(ks[4], (n_outputs, n_inputs, 1), jnp.float32)
        bd = 0.01 * jax.random.normal(ks[5], (n_outputs,), jnp.float32)
    else:
        wd, bd = None, None
    return dict(w1=v1, g1=g1, b1=b1, w2=v2, g2=g2, b2=b2, wd=wd, bd=bd)


if __name__ == "__main__":
    key = jax.random.PRNGKey(0)
    k_x1, k_p1, k_x2, k_p2 = jax.random.split(key, 4)

    # ---- Config A: Cin != Cout (1x1 downsample residual), multi-tile path ----
    # tile_l=16 -> 2 L-tiles per batch element, exercising the carried halo.
    N, C_IN, C_OUT, L = 2, 4, 8, 32
    K, DIL = 3, 2
    PAD = (K - 1) * DIL
    x = jax.random.normal(k_x1, (N, C_IN, L), jnp.float32)   # PyTorch NCL input
    params = init_params(k_p1, C_IN, C_OUT, K)

    y = temporal_block_forward(x, params, kernel_size=K, dilation=DIL,
                               padding=PAD, tile_l=16)
    y = jax.block_until_ready(y)
    assert y.shape == (N, C_OUT, L), y.shape
    y_ref = reference_forward(x, params, kernel_size=K, dilation=DIL, padding=PAD)
    err = float(jnp.max(jnp.abs(y - y_ref)))
    assert err < 5e-3, f"downsample-path max abs error vs reference: {err}"

    # ---- Config B: Cin == Cout (identity residual, no wd/bd inputs), ----
    # ---- auto tile selection, fused-concat taps, bf16 output writeback ----
    N2, C2, L2 = 2, 8, 16
    K2, DIL2 = 2, 1
    PAD2 = (K2 - 1) * DIL2
    x2 = jax.random.normal(k_x2, (N2, C2, L2), jnp.float32)
    params2 = init_params(k_p2, C2, C2, K2)

    y2 = temporal_block_forward(x2, params2, kernel_size=K2, dilation=DIL2,
                                padding=PAD2, out_dtype=jnp.bfloat16,
                                fuse_taps=True)
    y2 = jax.block_until_ready(y2)
    assert y2.shape == (N2, C2, L2), y2.shape
    y2_ref = reference_forward(x2, params2, kernel_size=K2, dilation=DIL2,
                               padding=PAD2)
    err2 = float(jnp.max(jnp.abs(y2 - y2_ref)))
    assert err2 < 3e-2, f"identity-path (bf16 out) max abs error: {err2}"

    print("KERNEL_OK")
</pallas_src>

<mosaic_0001>
module attributes {stable_mosaic.version = 11 : i64} {
  func.func @_temporal_block_kernel(%arg0: i32, %arg1: i32, %arg2: memref<1x16x128xbf16, #tpu.memory_space<vmem>>, %arg3: memref<384x128xbf16, #tpu.memory_space<vmem>>, %arg4: memref<1x128xf32, #tpu.memory_space<vmem>>, %arg5: memref<384x128xbf16, #tpu.memory_space<vmem>>, %arg6: memref<1x128xf32, #tpu.memory_space<vmem>>, %arg7: memref<128x128xbf16, #tpu.memory_space<vmem>>, %arg8: memref<1x128xf32, #tpu.memory_space<vmem>>, %arg9: memref<1x16x128xf32, #tpu.memory_space<vmem>>, %arg10: memref<32x128xbf16, #tpu.memory_space<vmem>>, %arg11: memref<32x128xbf16, #tpu.memory_space<vmem>>) attributes {dimension_semantics = [#tpu.dimension_semantics<parallel>, #tpu.dimension_semantics<arbitrary>], iteration_bounds = array<i64: 2, 2>, scalar_prefetch = 0 : i64, scratch_operands = 2 : i64, tpu.core_type = #tpu.core_type<tc>, window_params = [{transform_indices = @transform_0, window_bounds = array<i64: 1, 16, 128>}, {pipeline_mode = #tpu.pipeline_mode<synchronous>, transform_indices = @transform_1, window_bounds = array<i64: 384, 128>}, {pipeline_mode = #tpu.pipeline_mode<synchronous>, transform_indices = @transform_2, window_bounds = array<i64: 1, 128>}, {pipeline_mode = #tpu.pipeline_mode<synchronous>, transform_indices = @transform_3, window_bounds = array<i64: 384, 128>}, {pipeline_mode = #tpu.pipeline_mode<synchronous>, transform_indices = @transform_4, window_bounds = array<i64: 1, 128>}, {pipeline_mode = #tpu.pipeline_mode<synchronous>, transform_indices = @transform_5, window_bounds = array<i64: 128, 128>}, {pipeline_mode = #tpu.pipeline_mode<synchronous>, transform_indices = @transform_6, window_bounds = array<i64: 1, 128>}, {transform_indices = @transform_7, window_bounds = array<i64: 1, 16, 128>}]} {
    %c0_i32 = arith.constant 0 : i32
    %0 = arith.cmpi eq, %arg1, %c0_i32 : i32
    %1 = arith.extui %0 : i1 to i32
    %c0_i32_0 = arith.constant 0 : i32
    %2 = arith.cmpi ne, %1, %c0_i32_0 : i32
    scf.if %2 {
      %cst_43 = arith.constant 0.000000e+00 : bf16
      %52 = vector.broadcast %cst_43 : bf16 to vector<4x128xbf16>
      %c12_44 = arith.constant 12 : index
      %c0_45 = arith.constant 0 : index
      %53 = vector.load %arg10[%c12_44, %c0_45] : memref<32x128xbf16, #tpu.memory_space<vmem>>, vector<4x128xbf16>
      tpu.vector_store %arg10[%c12_44, %c0_45], %52 {strides = array<i32>} : memref<32x128xbf16, #tpu.memory_space<vmem>>, vector<4x128xbf16>,
      %cst_46 = arith.constant 0.000000e+00 : bf16
      %54 = vector.broadcast %cst_46 : bf16 to vector<4x128xbf16>
      %c12_47 = arith.constant 12 : index
      %c0_48 = arith.constant 0 : index
      %55 = vector.load %arg11[%c12_47, %c0_48] : memref<32x128xbf16, #tpu.memory_space<vmem>>, vector<4x128xbf16>
      tpu.vector_store %arg11[%c12_47, %c0_48], %54 {strides = array<i32>} : memref<32x128xbf16, #tpu.memory_space<vmem>>, vector<4x128xbf16>,
    } else {
    }
    %c0 = arith.constant 0 : index
    %c0_1 = arith.constant 0 : index
    %c0_2 = arith.constant 0 : index
    %3 = vector.load %arg2[%c0, %c0_1, %c0_2] : memref<1x16x128xbf16, #tpu.memory_space<vmem>>, vector<1x16x128xbf16>
    %4 = vector.shape_cast %3 : vector<1x16x128xbf16> to vector<16x128xbf16>
    %c16 = arith.constant 16 : index
    %c0_3 = arith.constant 0 : index
    %5 = vector.load %arg10[%c16, %c0_3] : memref<32x128xbf16, #tpu.memory_space<vmem>>, vector<16x128xbf16>
    tpu.vector_store %arg10[%c16, %c0_3], %4 {strides = array<i32>} : memref<32x128xbf16, #tpu.memory_space<vmem>>, vector<16x128xbf16>,
    %c256 = arith.constant 256 : index
    %c0_4 = arith.constant 0 : index
    %6 = vector.load %arg3[%c256, %c0_4] : memref<384x128xbf16, #tpu.memory_space<vmem>>, vector<128x128xbf16>
    %cst = arith.constant dense<0.000000e+00> : vector<16x128xf32>
    %7 = tpu.matmul %4, %6, %cst {dimension_numbers = #tpu.dot_dimension_numbers<[1], [0], [0], [1], [0, 0, 1, 1], [], []>} : vector<16x128xbf16>, vector<128x128xbf16>, vector<16x128xf32> -> vector<16x128xf32>
    %c12 = arith.constant 12 : index
    %c0_5 = arith.constant 0 : index
    %8 = vector.load %arg10[%c12, %c0_5] : memref<32x128xbf16, #tpu.memory_space<vmem>>, vector<16x128xbf16>
    %c0_6 = arith.constant 0 : index
    %c0_7 = arith.constant 0 : index
    %9 = vector.load %arg3[%c0_6, %c0_7] : memref<384x128xbf16, #tpu.memory_space<vmem>>, vector<128x128xbf16>
    %cst_8 = arith.constant dense<0.000000e+00> : vector<16x128xf32>
    %10 = tpu.matmul %8, %9, %cst_8 {dimension_numbers = #tpu.dot_dimension_numbers<[1], [0], [0], [1], [0, 0, 1, 1], [], []>} : vector<16x128xbf16>, vector<128x128xbf16>, vector<16x128xf32> -> vector<16x128xf32>
    %11 = arith.addf %7, %10 : vector<16x128xf32>
    %c14 = arith.constant 14 : index
    %c0_9 = arith.constant 0 : index
    %12 = vector.load %arg10[%c14, %c0_9] : memref<32x128xbf16, #tpu.memory_space<vmem>>, vector<16x128xbf16>
    %c128 = arith.constant 128 : index
    %c0_10 = arith.constant 0 : index
    %13 = vector.load %arg3[%c128, %c0_10] : memref<384x128xbf16, #tpu.memory_space<vmem>>, vector<128x128xbf16>
    %cst_11 = arith.constant dense<0.000000e+00> : vector<16x128xf32>
    %14 = tpu.matmul %12, %13, %cst_11 {dimension_numbers = #tpu.dot_dimension_numbers<[1], [0], [0], [1], [0, 0, 1, 1], [], []>} : vector<16x128xbf16>, vector<128x128xbf16>, vector<16x128xf32> -> vector<16x128xf32>
    %15 = arith.addf %11, %14 : vector<16x128xf32>
    %c0_12 = arith.constant 0 : index
    %c0_13 = arith.constant 0 : index
    %16 = vector.load %arg4[%c0_12, %c0_13] : memref<1x128xf32, #tpu.memory_space<vmem>>, vector<1x128xf32>
    %17 = vector.broadcast %16 : vector<1x128xf32> to vector<16x128xf32>
    %18 = arith.addf %15, %17 : vector<16x128xf32>
    %cst_14 = arith.constant 0.000000e+00 : f32
    %19 = vector.broadcast %cst_14 : f32 to vector<16x128xf32>
    %20 = arith.maximumf %18, %19 : vector<16x128xf32>
    %21 = arith.truncf %20 : vector<16x128xf32> to vector<16x128xbf16>
    %c16_15 = arith.constant 16 : index
    %c0_16 = arith.constant 0 : index
    %22 = vector.load %arg11[%c16_15, %c0_16] : memref<32x128xbf16, #tpu.memory_space<vmem>>, vector<16x128xbf16>
    tpu.vector_store %arg11[%c16_15, %c0_16], %21 {strides = array<i32>} : memref<32x128xbf16, #tpu.memory_space<vmem>>, vector<16x128xbf16>,
    %c256_17 = arith.constant 256 : index
    %c0_18 = arith.constant 0 : index
    %23 = vector.load %arg5[%c256_17, %c0_18] : memref<384x128xbf16, #tpu.memory_space<vmem>>, vector<128x128xbf16>
    %cst_19 = arith.constant dense<0.000000e+00> : vector<16x128xf32>
    %24 = tpu.matmul %21, %23, %cst_19 {dimension_numbers = #tpu.dot_dimension_numbers<[1], [0], [0], [1], [0, 0, 1, 1], [], []>} : vector<16x128xbf16>, vector<128x128xbf16>, vector<16x128xf32> -> vector<16x128xf32>
    %c12_20 = arith.constant 12 : index
    %c0_21 = arith.constant 0 : index
    %25 = vector.load %arg11[%c12_20, %c0_21] : memref<32x128xbf16, #tpu.memory_space<vmem>>, vector<16x128xbf16>
    %c0_22 = arith.constant 0 : index
    %c0_23 = arith.constant 0 : index
    %26 = vector.load %arg5[%c0_22, %c0_23] : memref<384x128xbf16, #tpu.memory_space<vmem>>, vector<128x128xbf16>
    %cst_24 = arith.constant dense<0.000000e+00> : vector<16x128xf32>
    %27 = tpu.matmul %25, %26, %cst_24 {dimension_numbers = #tpu.dot_dimension_numbers<[1], [0], [0], [1], [0, 0, 1, 1], [], []>} : vector<16x128xbf16>, vector<128x128xbf16>, vector<16x128xf32> -> vector<16x128xf32>
    %28 = arith.addf %24, %27 : vector<16x128xf32>
    %c14_25 = arith.constant 14 : index
    %c0_26 = arith.constant 0 : index
    %29 = vector.load %arg11[%c14_25, %c0_26] : memref<32x128xbf16, #tpu.memory_space<vmem>>, vector<16x128xbf16>
    %c128_27 = arith.constant 128 : index
    %c0_28 = arith.constant 0 : index
    %30 = vector.load %arg5[%c128_27, %c0_28] : memref<384x128xbf16, #tpu.memory_space<vmem>>, vector<128x128xbf16>
    %cst_29 = arith.constant dense<0.000000e+00> : vector<16x128xf32>
    %31 = tpu.matmul %29, %30, %cst_29 {dimension_numbers = #tpu.dot_dimension_numbers<[1], [0], [0], [1], [0, 0, 1, 1], [], []>} : vector<16x128xbf16>, vector<128x128xbf16>, vector<16x128xf32> -> vector<16x128xf32>
    %32 = arith.addf %28, %31 : vector<16x128xf32>
    %c0_30 = arith.constant 0 : index
    %c0_31 = arith.constant 0 : index
    %33 = vector.load %arg6[%c0_30, %c0_31] : memref<1x128xf32, #tpu.memory_space<vmem>>, vector<1x128xf32>
    %34 = vector.broadcast %33 : vector<1x128xf32> to vector<16x128xf32>
    %35 = arith.addf %32, %34 : vector<16x128xf32>
    %cst_32 = arith.constant 0.000000e+00 : f32
    %36 = vector.broadcast %cst_32 : f32 to vector<16x128xf32>
    %37 = arith.maximumf %35, %36 : vector<16x128xf32>
    %c0_33 = arith.constant 0 : index
    %c0_34 = arith.constant 0 : index
    %38 = vector.load %arg7[%c0_33, %c0_34] : memref<128x128xbf16, #tpu.memory_space<vmem>>, vector<128x128xbf16>
    %cst_35 = arith.constant dense<0.000000e+00> : vector<16x128xf32>
    %39 = tpu.matmul %4, %38, %cst_35 {dimension_numbers = #tpu.dot_dimension_numbers<[1], [0], [0], [1], [0, 0, 1, 1], [], []>} : vector<16x128xbf16>, vector<128x128xbf16>, vector<16x128xf32> -> vector<16x128xf32>
    %c0_36 = arith.constant 0 : index
    %c0_37 = arith.constant 0 : index
    %40 = vector.load %arg8[%c0_36, %c0_37] : memref<1x128xf32, #tpu.memory_space<vmem>>, vector<1x128xf32>
    %41 = vector.broadcast %40 : vector<1x128xf32> to vector<16x128xf32>
    %42 = arith.addf %39, %41 : vector<16x128xf32>
    %43 = arith.addf %37, %42 : vector<16x128xf32>
    %cst_38 = arith.constant 0.000000e+00 : f32
    %44 = vector.broadcast %cst_38 : f32 to vector<16x128xf32>
    %45 = arith.maximumf %43, %44 : vector<16x128xf32>
    %c0_39 = arith.constant 0 : index
    %c0_40 = arith.constant 0 : index
    %c0_41 = arith.constant 0 : index
    %46 = vector.load %arg9[%c0_39, %c0_40, %c0_41] : memref<1x16x128xf32, #tpu.memory_space<vmem>>, vector<1x16x128xf32>
    %47 = vector.shape_cast %46 : vector<1x16x128xf32> to vector<16x128xf32>
    %48 = vector.shape_cast %45 : vector<16x128xf32> to vector<1x16x128xf32>
    tpu.vector_store %arg9[%c0_39, %c0_40, %c0_41], %48 {strides = array<i32>} : memref<1x16x128xf32, #tpu.memory_space<vmem>>, vector<1x16x128xf32>,
    %c1_i32 = arith.constant 1 : i32
    %49 = arith.cmpi slt, %arg1, %c1_i32 : i32
    %50 = arith.extui %49 : i1 to i32
    %c0_i32_42 = arith.constant 0 : i32
    %51 = arith.cmpi ne, %50, %c0_i32_42 : i32
    scf.if %51 {
      %c28 = arith.constant 28 : index
      %c0_43 = arith.constant 0 : index
      %52 = vector.load %arg10[%c28, %c0_43] : memref<32x128xbf16, #tpu.memory_space<vmem>>, vector<4x128xbf16>
      %c12_44 = arith.constant 12 : index
      %c0_45 = arith.constant 0 : index
      %53 = vector.load %arg10[%c12_44, %c0_45] : memref<32x128xbf16, #tpu.memory_space<vmem>>, vector<4x128xbf16>
      tpu.vector_store %arg10[%c12_44, %c0_45], %52 {strides = array<i32>} : memref<32x128xbf16, #tpu.memory_space<vmem>>, vector<4x128xbf16>,
      %c28_46 = arith.constant 28 : index
      %c0_47 = arith.constant 0 : index
      %54 = vector.load %arg11[%c28_46, %c0_47] : memref<32x128xbf16, #tpu.memory_space<vmem>>, vector<4x128xbf16>
      %c12_48 = arith.constant 12 : index
      %c0_49 = arith.constant 0 : index
      %55 = vector.load %arg11[%c12_48, %c0_49] : memref<32x128xbf16, #tpu.memory_space<vmem>>, vector<4x128xbf16>
      tpu.vector_store %arg11[%c12_48, %c0_49], %54 {strides = array<i32>} : memref<32x128xbf16, #tpu.memory_space<vmem>>, vector<4x128xbf16>,
    } else {
    }
    return
  }
  func.func @transform_0(%arg0: i32, %arg1: i32) -> (i32, i32, i32) {
    %c0_i32 = arith.constant 0 : i32
    %c0_i32_0 = arith.constant 0 : i32
    return %arg0, %arg1, %c0_i32 : i32, i32, i32
  }
  func.func @transform_1(%arg0: i32, %arg1: i32) -> (i32, i32) {
    %c0_i32 = arith.constant 0 : i32
    %c0_i32_0 = arith.constant 0 : i32
    %c0_i32_1 = arith.constant 0 : i32
    return %c0_i32, %c0_i32_0 : i32, i32
  }
  func.func @transform_2(%arg0: i32, %arg1: i32) -> (i32, i32) {
    %c0_i32 = arith.constant 0 : i32
    %c0_i32_0 = arith.constant 0 : i32
    %c0_i32_1 = arith.constant 0 : i32
    return %c0_i32, %c0_i32_0 : i32, i32
  }
  func.func @transform_3(%arg0: i32, %arg1: i32) -> (i32, i32) {
    %c0_i32 = arith.constant 0 : i32
    %c0_i32_0 = arith.constant 0 : i32
    %c0_i32_1 = arith.constant 0 : i32
    return %c0_i32, %c0_i32_0 : i32, i32
  }
  func.func @transform_4(%arg0: i32, %arg1: i32) -> (i32, i32) {
    %c0_i32 = arith.constant 0 : i32
    %c0_i32_0 = arith.constant 0 : i32
    %c0_i32_1 = arith.constant 0 : i32
    return %c0_i32, %c0_i32_0 : i32, i32
  }
  func.func @transform_5(%arg0: i32, %arg1: i32) -> (i32, i32) {
    %c0_i32 = arith.constant 0 : i32
    %c0_i32_0 = arith.constant 0 : i32
    %c0_i32_1 = arith.constant 0 : i32
    return %c0_i32, %c0_i32_0 : i32, i32
  }
  func.func @transform_6(%arg0: i32, %arg1: i32) -> (i32, i32) {
    %c0_i32 = arith.constant 0 : i32
    %c0_i32_0 = arith.constant 0 : i32
    %c0_i32_1 = arith.constant 0 : i32
    return %c0_i32, %c0_i32_0 : i32, i32
  }
  func.func @transform_7(%arg0: i32, %arg1: i32) -> (i32, i32, i32) {
    %c0_i32 = arith.constant 0 : i32
    %c0_i32_0 = arith.constant 0 : i32
    return %arg0, %arg1, %c0_i32 : i32, i32, i32
  }
}

module attributes {stable_mosaic.version = 11 : i64} {
  func.func @_temporal_block_kernel(%arg0: i32, %arg1: i32, %arg2: memref<1x16x128xbf16, #tpu.memory_space<vmem>>, %arg3: memref<384x128xbf16, #tpu.memory_space<vmem>>, %arg4: memref<1x128xf32, #tpu.memory_space<vmem>>, %arg5: memref<384x128xbf16, #tpu.memory_space<vmem>>, %arg6: memref<1x128xf32, #tpu.memory_space<vmem>>, %arg7: memref<128x128xbf16, #tpu.memory_space<vmem>>, %arg8: memref<1x128xf32, #tpu.memory_space<vmem>>, %arg9: memref<1x16x128xf32, #tpu.memory_space<vmem>>, %arg10: memref<32x128xbf16, #tpu.memory_space<vmem>>, %arg11: memref<32x128xbf16, #tpu.memory_space<vmem>>) attributes {dimension_semantics = [#tpu.dimension_semantics<parallel>, #tpu.dimension_semantics<arbitrary>], iteration_bounds = array<i64: 2, 2>, scalar_prefetch = 0 : i64, scratch_operands = 2 : i64, tpu.core_type = #tpu.core_type<tc>, window_params = [{transform_indices = @transform_0, window_bounds = array<i64: 1, 16, 128>}, {pipeline_mode = #tpu.pipeline_mode<synchronous>, transform_indices = @transform_1, window_bounds = array<i64: 384, 128>}, {pipeline_mode = #tpu.pipeline_mode<synchronous>, transform_indices = @transform_2, window_bounds = array<i64: 1, 128>}, {pipeline_mode = #tpu.pipeline_mode<synchronous>, transform_indices = @transform_3, window_bounds = array<i64: 384, 128>}, {pipeline_mode = #tpu.pipeline_mode<synchronous>, transform_indices = @transform_4, window_bounds = array<i64: 1, 128>}, {pipeline_mode = #tpu.pipeline_mode<synchronous>, transform_indices = @transform_5, window_bounds = array<i64: 128, 128>}, {pipeline_mode = #tpu.pipeline_mode<synchronous>, transform_indices = @transform_6, window_bounds = array<i64: 1, 128>}, {transform_indices = @transform_7, window_bounds = array<i64: 1, 16, 128>}]} {
    %c0_i32 = arith.constant 0 : i32
    %0 = arith.cmpi eq, %arg1, %c0_i32 : i32
    %1 = arith.extui %0 : i1 to i32
    %c0_i32_0 = arith.constant 0 : i32
    %2 = arith.cmpi ne, %1, %c0_i32_0 : i32
    scf.if %2 {
      %cst_43 = arith.constant 0.000000e+00 : bf16
      %52 = vector.broadcast %cst_43 : bf16 to vector<4x128xbf16>
      %c12_44 = arith.constant 12 : index
      %c0_45 = arith.constant 0 : index
      %53 = vector.load %arg10[%c12_44, %c0_45] : memref<32x128xbf16, #tpu.memory_space<vmem>>, vector<4x128xbf16>
      tpu.vector_store %arg10[%c12_44, %c0_45], %52 {strides = array<i32>} : memref<32x128xbf16, #tpu.memory_space<vmem>>, vector<4x128xbf16>,
      %cst_46 = arith.constant 0.000000e+00 : bf16
      %54 = vector.broadcast %cst_46 : bf16 to vector<4x128xbf16>
      %c12_47 = arith.constant 12 : index
      %c0_48 = arith.constant 0 : index
      %55 = vector.load %arg11[%c12_47, %c0_48] : memref<32x128xbf16, #tpu.memory_space<vmem>>, vector<4x128xbf16>
      tpu.vector_store %arg11[%c12_47, %c0_48], %54 {strides = array<i32>} : memref<32x128xbf16, #tpu.memory_space<vmem>>, vector<4x128xbf16>,
    } else {
    }
    %c0 = arith.constant 0 : index
    %c0_1 = arith.constant 0 : index
    %c0_2 = arith.constant 0 : index
    %3 = vector.load %arg2[%c0, %c0_1, %c0_2] : memref<1x16x128xbf16, #tpu.memory_space<vmem>>, vector<1x16x128xbf16>
    %4 = vector.shape_cast %3 : vector<1x16x128xbf16> to vector<16x128xbf16>
    %c16 = arith.constant 16 : index
    %c0_3 = arith.constant 0 : index
    %5 = vector.load %arg10[%c16, %c0_3] : memref<32x128xbf16, #tpu.memory_space<vmem>>, vector<16x128xbf16>
    tpu.vector_store %arg10[%c16, %c0_3], %4 {strides = array<i32>} : memref<32x128xbf16, #tpu.memory_space<vmem>>, vector<16x128xbf16>,
    %c256 = arith.constant 256 : index
    %c0_4 = arith.constant 0 : index
    %6 = vector.load %arg3[%c256, %c0_4] : memref<384x128xbf16, #tpu.memory_space<vmem>>, vector<128x128xbf16>
    %cst = arith.constant dense<0.000000e+00> : vector<16x128xf32>
    %7 = tpu.matmul %4, %6, %cst {dimension_numbers = #tpu.dot_dimension_numbers<[1], [0], [0], [1], [0, 0, 1, 1], [], []>} : vector<16x128xbf16>, vector<128x128xbf16>, vector<16x128xf32> -> vector<16x128xf32>
    %c12 = arith.constant 12 : index
    %c0_5 = arith.constant 0 : index
    %8 = vector.load %arg10[%c12, %c0_5] : memref<32x128xbf16, #tpu.memory_space<vmem>>, vector<16x128xbf16>
    %c0_6 = arith.constant 0 : index
    %c0_7 = arith.constant 0 : index
    %9 = vector.load %arg3[%c0_6, %c0_7] : memref<384x128xbf16, #tpu.memory_space<vmem>>, vector<128x128xbf16>
    %cst_8 = arith.constant dense<0.000000e+00> : vector<16x128xf32>
    %10 = tpu.matmul %8, %9, %cst_8 {dimension_numbers = #tpu.dot_dimension_numbers<[1], [0], [0], [1], [0, 0, 1, 1], [], []>} : vector<16x128xbf16>, vector<128x128xbf16>, vector<16x128xf32> -> vector<16x128xf32>
    %11 = arith.addf %7, %10 : vector<16x128xf32>
    %c14 = arith.constant 14 : index
    %c0_9 = arith.constant 0 : index
    %12 = vector.load %arg10[%c14, %c0_9] : memref<32x128xbf16, #tpu.memory_space<vmem>>, vector<16x128xbf16>
    %c128 = arith.constant 128 : index
    %c0_10 = arith.constant 0 : index
    %13 = vector.load %arg3[%c128, %c0_10] : memref<384x128xbf16, #tpu.memory_space<vmem>>, vector<128x128xbf16>
    %cst_11 = arith.constant dense<0.000000e+00> : vector<16x128xf32>
    %14 = tpu.matmul %12, %13, %cst_11 {dimension_numbers = #tpu.dot_dimension_numbers<[1], [0], [0], [1], [0, 0, 1, 1], [], []>} : vector<16x128xbf16>, vector<128x128xbf16>, vector<16x128xf32> -> vector<16x128xf32>
    %15 = arith.addf %11, %14 : vector<16x128xf32>
    %c0_12 = arith.constant 0 : index
    %c0_13 = arith.constant 0 : index
    %16 = vector.load %arg4[%c0_12, %c0_13] : memref<1x128xf32, #tpu.memory_space<vmem>>, vector<1x128xf32>
    %17 = vector.broadcast %16 : vector<1x128xf32> to vector<16x128xf32>
    %18 = arith.addf %15, %17 : vector<16x128xf32>
    %cst_14 = arith.constant 0.000000e+00 : f32
    %19 = vector.broadcast %cst_14 : f32 to vector<16x128xf32>
    %20 = arith.maximumf %18, %19 : vector<16x128xf32>
    %21 = arith.truncf %20 : vector<16x128xf32> to vector<16x128xbf16>
    %c16_15 = arith.constant 16 : index
    %c0_16 = arith.constant 0 : index
    %22 = vector.load %arg11[%c16_15, %c0_16] : memref<32x128xbf16, #tpu.memory_space<vmem>>, vector<16x128xbf16>
    tpu.vector_store %arg11[%c16_15, %c0_16], %21 {strides = array<i32>} : memref<32x128xbf16, #tpu.memory_space<vmem>>, vector<16x128xbf16>,
    %c256_17 = arith.constant 256 : index
    %c0_18 = arith.constant 0 : index
    %23 = vector.load %arg5[%c256_17, %c0_18] : memref<384x128xbf16, #tpu.memory_space<vmem>>, vector<128x128xbf16>
    %cst_19 = arith.constant dense<0.000000e+00> : vector<16x128xf32>
    %24 = tpu.matmul %21, %23, %cst_19 {dimension_numbers = #tpu.dot_dimension_numbers<[1], [0], [0], [1], [0, 0, 1, 1], [], []>} : vector<16x128xbf16>, vector<128x128xbf16>, vector<16x128xf32> -> vector<16x128xf32>
    %c12_20 = arith.constant 12 : index
    %c0_21 = arith.constant 0 : index
    %25 = vector.load %arg11[%c12_20, %c0_21] : memref<32x128xbf16, #tpu.memory_space<vmem>>, vector<16x128xbf16>
    %c0_22 = arith.constant 0 : index
    %c0_23 = arith.constant 0 : index
    %26 = vector.load %arg5[%c0_22, %c0_23] : memref<384x128xbf16, #tpu.memory_space<vmem>>, vector<128x128xbf16>
    %cst_24 = arith.constant dense<0.000000e+00> : vector<16x128xf32>
    %27 = tpu.matmul %25, %26, %cst_24 {dimension_numbers = #tpu.dot_dimension_numbers<[1], [0], [0], [1], [0, 0, 1, 1], [], []>} : vector<16x128xbf16>, vector<128x128xbf16>, vector<16x128xf32> -> vector<16x128xf32>
    %28 = arith.addf %24, %27 : vector<16x128xf32>
    %c14_25 = arith.constant 14 : index
    %c0_26 = arith.constant 0 : index
    %29 = vector.load %arg11[%c14_25, %c0_26] : memref<32x128xbf16, #tpu.memory_space<vmem>>, vector<16x128xbf16>
    %c128_27 = arith.constant 128 : index
    %c0_28 = arith.constant 0 : index
    %30 = vector.load %arg5[%c128_27, %c0_28] : memref<384x128xbf16, #tpu.memory_space<vmem>>, vector<128x128xbf16>
    %cst_29 = arith.constant dense<0.000000e+00> : vector<16x128xf32>
    %31 = tpu.matmul %29, %30, %cst_29 {dimension_numbers = #tpu.dot_dimension_numbers<[1], [0], [0], [1], [0, 0, 1, 1], [], []>} : vector<16x128xbf16>, vector<128x128xbf16>, vector<16x128xf32> -> vector<16x128xf32>
    %32 = arith.addf %28, %31 : vector<16x128xf32>
    %c0_30 = arith.constant 0 : index
    %c0_31 = arith.constant 0 : index
    %33 = vector.load %arg6[%c0_30, %c0_31] : memref<1x128xf32, #tpu.memory_space<vmem>>, vector<1x128xf32>
    %34 = vector.broadcast %33 : vector<1x128xf32> to vector<16x128xf32>
    %35 = arith.addf %32, %34 : vector<16x128xf32>
    %cst_32 = arith.constant 0.000000e+00 : f32
    %36 = vector.broadcast %cst_32 : f32 to vector<16x128xf32>
    %37 = arith.maximumf %35, %36 : vector<16x128xf32>
    %c0_33 = arith.constant 0 : index
    %c0_34 = arith.constant 0 : index
    %38 = vector.load %arg7[%c0_33, %c0_34] : memref<128x128xbf16, #tpu.memory_space<vmem>>, vector<128x128xbf16>
    %cst_35 = arith.constant dense<0.000000e+00> : vector<16x128xf32>
    %39 = tpu.matmul %4, %38, %cst_35 {dimension_numbers = #tpu.dot_dimension_numbers<[1], [0], [0], [1], [0, 0, 1, 1], [], []>} : vector<16x128xbf16>, vector<128x128xbf16>, vector<16x128xf32> -> vector<16x128xf32>
    %c0_36 = arith.constant 0 : index
    %c0_37 = arith.constant 0 : index
    %40 = vector.load %arg8[%c0_36, %c0_37] : memref<1x128xf32, #tpu.memory_space<vmem>>, vector<1x128xf32>
    %41 = vector.broadcast %40 : vector<1x128xf32> to vector<16x128xf32>
    %42 = arith.addf %39, %41 : vector<16x128xf32>
    %43 = arith.addf %37, %42 : vector<16x128xf32>
    %cst_38 = arith.constant 0.000000e+00 : f32
    %44 = vector.broadcast %cst_38 : f32 to vector<16x128xf32>
    %45 = arith.maximumf %43, %44 : vector<16x128xf32>
    %c0_39 = arith.constant 0 : index
    %c0_40 = arith.constant 0 : index
    %c0_41 = arith.constant 0 : index
    %46 = vector.load %arg9[%c0_39, %c0_40, %c0_41] : memref<1x16x128xf32, #tpu.memory_space<vmem>>, vector<1x16x128xf32>
    %47 = vector.shape_cast %46 : vector<1x16x128xf32> to vector<16x128xf32>
    %48 = vector.shape_cast %45 : vector<16x128xf32> to vector<1x16x128xf32>
    tpu.vector_store %arg9[%c0_39, %c0_40, %c0_41], %48 {strides = array<i32>} : memref<1x16x128xf32, #tpu.memory_space<vmem>>, vector<1x16x128xf32>,
    %c1_i32 = arith.constant 1 : i32
    %49 = arith.cmpi slt, %arg1, %c1_i32 : i32
    %50 = arith.extui %49 : i1 to i32
    %c0_i32_42 = arith.constant 0 : i32
    %51 = arith.cmpi ne, %50, %c0_i32_42 : i32
    scf.if %51 {
      %c28 = arith.constant 28 : index
      %c0_43 = arith.constant 0 : index
      %52 = vector.load %arg10[%c28, %c0_43] : memref<32x128xbf16, #tpu.memory_space<vmem>>, vector<4x128xbf16>
      %c12_44 = arith.constant 12 : index
      %c0_45 = arith.constant 0 : index
      %53 = vector.load %arg10[%c12_44, %c0_45] : memref<32x128xbf16, #tpu.memory_space<vmem>>, vector<4x128xbf16>
      tpu.vector_store %arg10[%c12_44, %c0_45], %52 {strides = array<i32>} : memref<32x128xbf16, #tpu.memory_space<vmem>>, vector<4x128xbf16>,
      %c28_46 = arith.constant 28 : index
      %c0_47 = arith.constant 0 : index
      %54 = vector.load %arg11[%c28_46, %c0_47] : memref<32x128xbf16, #tpu.memory_space<vmem>>, vector<4x128xbf16>
      %c12_48 = arith.constant 12 : index
      %c0_49 = arith.constant 0 : index
      %55 = vector.load %arg11[%c12_48, %c0_49] : memref<32x128xbf16, #tpu.memory_space<vmem>>, vector<4x128xbf16>
      tpu.vector_store %arg11[%c12_48, %c0_49], %54 {strides = array<i32>} : memref<32x128xbf16, #tpu.memory_space<vmem>>, vector<4x128xbf16>,
    } else {
    }
    return
  }
  func.func @transform_0(%arg0: i32, %arg1: i32) -> (i32, i32, i32) {
    %c0_i32 = arith.constant 0 : i32
    %c0_i32_0 = arith.constant 0 : i32
    return %arg0, %arg1, %c0_i32 : i32, i32, i32
  }
  func.func @transform_1(%arg0: i32, %arg1: i32) -> (i32, i32) {
    %c0_i32 = arith.constant 0 : i32
    %c0_i32_0 = arith.constant 0 : i32
    %c0_i32_1 = arith.constant 0 : i32
    return %c0_i32, %c0_i32_0 : i32, i32
  }
  func.func @transform_2(%arg0: i32, %arg1: i32) -> (i32, i32) {
    %c0_i32 = arith.constant 0 : i32
    %c0_i32_0 = arith.constant 0 : i32
    %c0_i32_1 = arith.constant 0 : i32
    return %c0_i32, %c0_i32_0 : i32, i32
  }
  func.func @transform_3(%arg0: i32, %arg1: i32) -> (i32, i32) {
    %c0_i32 = arith.constant 0 : i32
    %c0_i32_0 = arith.constant 0 : i32
    %c0_i32_1 = arith.constant 0 : i32
    return %c0_i32, %c0_i32_0 : i32, i32
  }
  func.func @transform_4(%arg0: i32, %arg1: i32) -> (i32, i32) {
    %c0_i32 = arith.constant 0 : i32
    %c0_i32_0 = arith.constant 0 : i32
    %c0_i32_1 = arith.constant 0 : i32
    return %c0_i32, %c0_i32_0 : i32, i32
  }
  func.func @transform_5(%arg0: i32, %arg1: i32) -> (i32, i32) {
    %c0_i32 = arith.constant 0 : i32
    %c0_i32_0 = arith.constant 0 : i32
    %c0_i32_1 = arith.constant 0 : i32
    return %c0_i32, %c0_i32_0 : i32, i32
  }
  func.func @transform_6(%arg0: i32, %arg1: i32) -> (i32, i32) {
    %c0_i32 = arith.constant 0 : i32
    %c0_i32_0 = arith.constant 0 : i32
    %c0_i32_1 = arith.constant 0 : i32
    return %c0_i32, %c0_i32_0 : i32, i32
  }
  func.func @transform_7(%arg0: i32, %arg1: i32) -> (i32, i32, i32) {
    %c0_i32 = arith.constant 0 : i32
    %c0_i32_0 = arith.constant 0 : i32
    return %arg0, %arg1, %c0_i32 : i32, i32, i32
  }
}

</mosaic_0001>

<bundles_post_ra>
// kernel: tpu_custom_call.1
= control target key start
LH: loop header
LB: loop body
LE: loop exit
PB: predicated region body
PF: predicated region fallthrough
CT: control target
= control target key end

     0   :  { %s2451_s0 = inlined_call_operand.hbm [shape: bf16[2,32,128], index: 0, kind: input, shape index: {}]   ;;  %s2452_s1 = inlined_call_operand.hbm [shape: bf16[384,128], index: 1, kind: input, shape index: {}]   ;;  %s2453_s2 = inlined_call_operand.vmem [shape: f32[1,128], index: 2, kind: input, shape index: {}]   ;;  %s2454_s3 = inlined_call_operand.hbm [shape: bf16[384,128], index: 3, kind: input, shape index: {}]   ;;  %s2455_s4 = inlined_call_operand.vmem [shape: f32[1,128], index: 4, kind: input, shape index: {}]   ;;  %s2456_s5 = inlined_call_operand.hbm [shape: bf16[128,128], index: 5, kind: input, shape index: {}]   ;;  %s2457_s6 = inlined_call_operand.vmem [shape: f32[1,128], index: 6, kind: input, shape index: {}]   ;;  %s2458_s7 = inlined_call_operand.hbm [shape: f32[2,32,128], index: 7, kind: output, shape index: {}]  }
   0x1   :  { %2468 = sst [smem:[#allocation22_spill]] %s2452_s1 }
   0x2   :  { %2469 = sst [smem:[#allocation23_spill]] %s2454_s3 }
   0x3   :  { %2470 = sst [smem:[#allocation24_spill]] %s2456_s5 }
   0x4   :  { %2471 = sst [smem:[#allocation25_spill]] %s2458_s7 }
   0x5   :  { %12 = vsyncpa [#allocation5], 0 }
   0x6   :  { %14 = vsyncpa [#allocation5 + $0x1], 0 }
   0x7   :  { %15 = vsyncpa [#allocation8], 0 }
   0x8   :  { %16 = vsyncpa [#allocation11], 0 }
   0x9   :  { %17 = vsyncpa [#allocation6], 0 }
   0xa   :  { %19 = vsyncpa [#allocation6 + $0x1], 0  ;;  %s2112_s24 = smov 0   ;;  %s2114_s25 = smov 0  }
   0xb   :  { %s2116_s26 = smov 0   ;;  %s2118_s27 = smov 0  }
   0xc   :  { %s2120_s28 = smov 0   ;;  %s2122_s29 = smov 0  }
   0xd   :  { %s2124_s30 = smov 0   ;;  %s2126_s8 = smov 0  }
   0xe LB: > { %2472 = sst [smem:[#allocation17_spill]] %s2030_s24  ;;  %s1361_s9 = sadd.s32 4294967295, %s2058_s8   ;;  %s2058_s8 = sphi %s2126_s8, %s25_s8   ;;  %s2054_s30 = sphi %s2124_s30, %s2502_s30   ;;  %s2050_s29 = sphi %s2122_s29, %s2497_s29   ;;  %s2046_s28 = sphi %s2120_s28, %s2501_s28   ;;  %s2042_s27 = sphi %s2118_s27, %s2496_s27   ;;  %s2038_s26 = sphi %s2116_s26, %s2500_s26   ;;  %s2034_s25 = sphi %s2114_s25, %s2499_s25   ;;  %s2030_s24 = sphi %s2112_s24, %s2498_s24  }
   0xf   : > { %2473 = sst [smem:[#allocation18_spill]] %s2050_s29  ;;  %s1362_s10 = sadd.s32 4294967294, %s2058_s8  }
  0x10   : > { %p59_p0 = scmp.ne.s32.totalorder %s2034_s25, %s2030_s24  ;;  %p2156_p1 = scmp.eq.s32.totalorder %s1361_s9, 0 }
  0x11   : > { %p2160_p2 = scmp.eq.s32.totalorder %s1361_s9, 3  ;;  %p217_p3 = scmp.eq.s32.totalorder %s1362_s10, 3 }
  0x12   : > { %p2166_p4 = por %p2156_p1, %p59_p0  ;;  %p1363_p5 = scmp.ge.s32.totalorder %s2058_s8, 1 }
  0x13   : > { %p2171_p6 = por %p217_p3, %p59_p0  ;;  %p224_p7 = scmp.lt.s32.totalorder %s2058_s8, 5 }
  0x14   : > { %s2060_s16 = smov [#allocation7]   ;;  %s2061_s19 = smov [#allocation9]  }
  0x15   : > { %s2477_s14 = scalar_select %p2171_p6, 1, 0 }
  0x16   : > { %p2176_p8 = pnand %p1363_p5, %p224_p7  ;;  %s236_s17 = sshll.u32 %s2060_s16, 4  ;;  %s237_s17 = int_to_ptr.vmem [resolvable:$true] %s236_s17 }
  0x17   : > { %2478 = sst [smem:[#allocation19_spill]] %s2477_s14  ;;  %s252_s20 = sshll.u32 %s2061_s19, 4  ;;  %s253_s20 = int_to_ptr.vmem [resolvable:$true] %s252_s20 }
  0x18   : > { %p1683_p9 = pneg %p2176_p8  ;;  %s2062_s21 = smov [#allocation10]  }
  0x19   : > { %s268_s22 = sshll.u32 %s2062_s21, 4  ;;  %s1859_s23 = scalar_lea.vmem %s237_s17, 3072  ;;  %s269_s22 = int_to_ptr.vmem [resolvable:$true] %s268_s22 }
  0x1a   : > { %p2184_p10 = pnand %p1683_p9, %p2156_p1  ;;  %p1860_p12 = scmp.ne.s32.totalorder %s237_s17, %s1859_s23 }
  0x1b   : > { %p1867_p3 = scmp.lt.s32.totalorder %s237_s17, %s237_s17  ;;  %p1868_p5 = scmp.lt.s32.totalorder %s1859_s23, %s1859_s23 }
  0x1c   : > { %p1850_p11 = pneg %p2184_p10 }
  0x1d   : > { %p1869_p7 = por %p1868_p5, %p1867_p3 }
  0x1e   : > { %p1862_p13 = pnand %p1860_p12, %p1850_p11 }
  0x20   : > { %p1863_p0 = pneg %p1862_p13 }
  0x22   : > { %p1870_p9 = pnand %p1869_p7, %p1863_p0 }
  0x24   : > { %1873 = shalt.err (!%p1870_p9)
}
  0x25   : > { %s2460_s9 = smov 64   ;;  %s2461_s10 = smov 4  }
  0x26   : > { %s2481_s1 = sld [smem:[#allocation22_spill]]  ;;  %s1885_s21 = scalar_lea.vmem %s253_s20, 3072 }
  0x27   : > { %p1886_p12 = scmp.ne.s32.totalorder %s253_s20, %s1885_s21  ;;  %p1893_p0 = scmp.lt.s32.totalorder %s253_s20, %s253_s20 }
  0x28   : > { %p1894_p5 = scmp.lt.s32.totalorder %s1885_s21, %s1885_s21 }
  0x29   : > { %p1888_p13 = pnand %p1886_p12, %p1850_p11 }
  0x2a   : > { %p1895_p7 = por %p1894_p5, %p1893_p0 }
  0x2b   : > { %p1889_p3 = pneg %p1888_p13 }
  0x2c   : > { %1686 = dma.hbm_to_vmem [thread:$0]  (!%p2184_p10), %s2481_s1, 3072, %s237_s17, [#allocation8], %s2460_s9, %s2460_s9, %s2461_s10  }
  0x2d   : > { %p1896_p9 = pnand %p1895_p7, %p1889_p3 }
  0x2f   : > { %1899 = shalt.err (!%p1896_p9)
}
  0x30   : > { %s2482_s3 = sld [smem:[#allocation23_spill]]  ;;  %s1911_s17 = scalar_lea.vmem %s269_s22, 1024 }
  0x31   : > { %p1912_p6 = scmp.ne.s32.totalorder %s269_s22, %s1911_s17  ;;  %p1919_p0 = scmp.lt.s32.totalorder %s269_s22, %s269_s22 }
  0x32   : > { %p1920_p3 = scmp.lt.s32.totalorder %s1911_s17, %s1911_s17 }
  0x33   : > { %p1914_p12 = pnand %p1912_p6, %p1850_p11 }
  0x34   : > { %p1921_p5 = por %p1920_p3, %p1919_p0 }
  0x35   : > { %p1915_p13 = pneg %p1914_p12 }
  0x36   : > { %1689 = dma.hbm_to_vmem [thread:$0]  (!%p2184_p10), %s2482_s3, 3072, %s253_s20, [#allocation8], %s2460_s9, %s2460_s9, %s2461_s10  }
  0x37   : > { %p1922_p7 = pnand %p1921_p5, %p1915_p13 }
  0x39   : > { %1925 = shalt.err (!%p1922_p7)
}
  0x3a   : > { %s2483_s5 = sld [smem:[#allocation24_spill]]  ;;  %s34_s18 = sadd.s32 1, %s2050_s29 }
  0x3b   : > { %p35_p6 = scmp.ge.s32.totalorder %s34_s18, 2  ;;  %s37_s20 = sadd.s32 1, %s2054_s30 }
  0x3c   : > { %s46_s19 = sadd.s32 1, %s2038_s26  ;;  %p53_p11 = scmp.ne.s32.totalorder %s2038_s26, %s2034_s25 }
  0x3d   : > { %s2504_s18 = smov (%p35_p6, %s34_s18), 0  ;;  %s2506_s20 = smov (!%p35_p6, %s37_s20), %s2054_s30 }
  0x3e   : > { %2484 = sst [smem:[#allocation20_spill]] %s2504_s18  ;;  %s42_s21 = ssub.s32 %s2050_s29, %s2504_s18 }
  0x3f   : > { %p54_p9 = scmp.eq.s32.totalorder %s2058_s8, 0  ;;  %p39_p12 = scmp.ge.s32.totalorder %s2506_s20, 2 }
  0x40   : > { %1692 = dma.hbm_to_vmem [thread:$0]  (!%p2184_p10), %s2483_s5, 1024, %s269_s22, [#allocation11], %s2460_s9, %s2460_s9, %s2461_s10  }
  0x41   : > { %p2236_p13 = por %p2160_p2, %p53_p11  ;;  %p2240_p10 = por %p54_p9, %p53_p11 }
  0x42   : > { %p1704_p0 = scmp.lt.s32.totalorder %s2058_s8, 4  ;;  %s2508_s20 = smov (%p39_p12, %s2506_s20), 0 }
  0x43   : > { %s2485_s23 = scalar_select %p2236_p13, 1, 0 }
  0x44   : > { %s285_s17 = sand.u32 1, %s2038_s26   ;;  %s1369_s14 = sshll.u32 %s2050_s29, 1 }
  0x45   : > { %2486 = sst [smem:[#allocation21_spill]] %s2485_s23  ;;  %s41_s16 = ssub.s32 %s2054_s30, %s2508_s20 }
  0x46   : > { %s43_s9 = sor.u32 %s42_s21, %s41_s16  ;;  %s1368_s10 = sshll.u32 %s285_s17, 3 }
  0x47   : > { %p44_p3 = scmp.eq.s32.totalorder %s43_s9, 0  ;;  %s1370_s12 = sshll.u32 %s2054_s30, 2 }
  0x48   : > { %s289_s1 = scalar_lea.vmem [#allocation4], %s1368_s10  ;;  %s295_s18 = sadd.s32 %s1370_s12, %s1369_s14 }
  0x49   : > { %s298_s3 = sshll.u32 %s289_s1, 4  ;;  %s1371_s24 = sshll.u32 %s295_s18, 6  ;;  %s299_s3 = int_to_ptr.vmem [resolvable:$true] %s298_s3 }
  0x4a   : > { %s2253_s5 = scalar_select %p44_p3, %s2038_s26, %s46_s19  }
  0x4b   : > { %p2259_p2 = pnand %p1704_p0, %p2240_p10  ;;  %s297_s21 = scalar_lea.hbm %s2451_s0, %s1371_s24 }
  0x4c   : > { %s286_s9 = scalar_lea.sflag [#allocation5], %s285_s17  ;;  %s1939_s1 = scalar_lea.vmem %s299_s3, 128 }
  0x4d   : > { %p1928_p5 = pneg %p2259_p2  ;;  %p1940_p7 = scmp.ne.s32.totalorder %s299_s3, %s1939_s1 }
  0x4e   : > { %s2065_s10 = smov [#allocation4]  }
  0x4f   : > { %p1942_p6 = pnand %p1940_p7, %p1928_p5  ;;  %s1944_s18 = sshll.u32 %s2065_s10, 4  ;;  %s1945_s18 = int_to_ptr.vmem [resolvable:$false] %s1944_s18 }
  0x50   : > { %s1946_s19 = scalar_lea.vmem %s1945_s18, 256  ;;  %p1947_p9 = scmp.lt.s32.totalorder %s299_s3, %s1945_s18 }
  0x51   : > { %p1943_p11 = pneg %p1942_p6  ;;  %p1948_p12 = scmp.lt.s32.totalorder %s1946_s19, %s1939_s1 }
  0x53   : > { %p1949_p10 = por %p1948_p12, %p1947_p9 }
  0x55   : > { %p1950_p0 = pnand %p1949_p10, %p1943_p11 }
  0x57   : > { %1953 = shalt.err (!%p1950_p0)
}
  0x58   : > { %s2489_s29 = smov 4   ;;  %s2490_s24 = smov 64  }
  0x59   : > { %1696 = dma.hbm_to_vmem [thread:$0]  (!%p2259_p2), %s297_s21, 128, %s299_s3, %s286_s9, %s2490_s24, %s2490_s24, %s2489_s29  }
  0x5a   : > { %310 = sbr.rel (%p2176_p8) target bundleno = 660 (0x294), region = 48  ;;  %s2276_s23 = sand.u32 (!%p2176_p8), 1, %s2034_s25  }
  0x5b   : > { %s1373_s22 = sshll.u32 (!%p2176_p8), %s2276_s23, 3  ;;  %s313_s17 = scalar_lea.sflag (!%p2176_p8), [#allocation5], %s2276_s23 }
  0x5c   : > { %s2280_s14 = scalar_lea.vmem (!%p2176_p8), [#allocation4], %s1373_s22 }
  0x5f   : > { %2013 = dma.done.wait (%p2166_p4), %s313_s17, 128  }
  0x60   : > { %2015 = vsyncadd (%p2166_p4), %s313_s17, 4294967168 }
  0x61   : > { %2017 = dma.done.wait (%p2156_p1), [#allocation8], 6144  }
  0x62   : > { %2019 = vsyncadd (%p2156_p1), [#allocation8], 4294961152 }
  0x63   : > { %2021 = dma.done.wait (%p2156_p1), [#allocation11], 1024  }
  0x64   : > { %2023 = vsyncadd (%p2156_p1), [#allocation11], 4294966272  ;;  %s1377_s3 = sshll.u32 %s2276_s23, 4  ;;  %p1378_p8 = scmp.ne.s32.totalorder %s2042_s27, 0 }
  0x65   : > { %s2295_s7 = scalar_lea.vmem [#allocation12], %s1377_s3 }
  0x66   : > { %365 = sbr.rel (%p1378_p8) target bundleno = 109 (0x6d), region = 68 }
  0x6b   : > { %v2066_v0 = vmov 0  }
  0x6c   : > { %366 = vst [vmem:[#allocation2 + $0x4] sm:$0xc] %v2066_v0  ;;  %367 = vst [vmem:[#allocation3 + $0x4] sm:$0xc] %v2066_v0 }
  0x6d PF: > { %v1783_v1 = vld [vmem:[#allocation7 + $0x38] sm:$0xff]   ;;  %v2067_v2 = vmov 0.0   ;;  %v1785_v4 = vld [vmem:[#allocation7 + $0x30] sm:$0xff]   ;;  %vm2068_vm0 = vmmov 0   ;;  %v1787_v6 = vld [vmem:[#allocation7 + $0x28] sm:$0xff]   ;;  %vm415_vm1 = vcmask 1045504  }
  0x6e   : > { %1527 = vmatprep.subr.bf16.mxu0 %v2067_v2  ;;  %1547 = vmatprep.subr.bf16.mxu1 %v2067_v2  ;;  %v1784_v3 = vld [vmem:[#allocation7 + $0xb8] sm:$0xff]   ;;  %v1786_v5 = vld [vmem:[#allocation7 + $0xb0] sm:$0xff]   ;;  %v1788_v7 = vld [vmem:[#allocation7 + $0xa8] sm:$0xff]   ;;  %vm628_vm2 = vcmask 1044480   ;;  %p1449_p1 = scmp.ge.s32.totalorder %s2042_s27, 1 }
  0x6f   : > { %1528 = vmatpush3.bf16.msra.mxu0 %v1783_v1  ;;  %1543 = vmatprep.mubr.msk.bf16.mxu0 %vm2068_vm0, %v2067_v2  ;;  %v1789_v8 = vld [vmem:[#allocation7 + $0x20] sm:$0xff]   ;;  %v1791_v10 = vld [vmem:[#allocation7 + $0x18] sm:$0xff]   ;;  %v1793_v14 = vld [vmem:[#allocation7 + $0x10] sm:$0xff]  }
  0x70   : > { %1548 = vmatpush3.bf16.msra.mxu1 %v1784_v3  ;;  %1529 = vmatprep.subr.bf16.mxu0 %v2067_v2  ;;  %v1790_v9 = vld [vmem:[#allocation7 + $0xa0] sm:$0xff]   ;;  %v1792_v11 = vld [vmem:[#allocation7 + $0x98] sm:$0xff]   ;;  %v1794_v15 = vld [vmem:[#allocation7 + $0x90] sm:$0xff]  }
  0x71   : > { %1549 = vmatprep.subr.bf16.mxu1 %v2067_v2  ;;  %1563 = vmatprep.mubr.msk.bf16.mxu1 %vm2068_vm0, %v2067_v2  ;;  %v368_v12 = vld [vmem:[%s2280_s14] sm:$0xf]  ;;  %v369_v13 = vld [vmem:[%s2280_s14 + $0x4] sm:$0xf]  ;;  %v1795_v16 = vld [vmem:[#allocation7 + $0x8] sm:$0xff]  }
  0x72   : > { %370 = vst [vmem:[#allocation2 + $0x8] sm:$0xf] %v368_v12  ;;  %371 = vst [vmem:[#allocation2 + $0xc] sm:$0xf] %v369_v13  ;;  %v1796_v18 = vld [vmem:[#allocation7 + $0x88] sm:$0xff]   ;;  %v1797_v22 = vld [vmem:[#allocation7] sm:$0xff]   ;;  %v2321_v28 = vcombine.low %v368_v12, %v369_v13 }
  0x73   : > { %1530 = vmatpush3.bf16.msra.mxu0 %v1785_v4  ;;  %v388_v17 = vld [vmem:[#allocation2 + $0x4] sm:$0xc]  ;;  %v1798_v23 = vld [vmem:[#allocation7 + $0x80] sm:$0xff]   ;;  %v1802_v26 = vld [vmem:[#allocation7 + $0x78] sm:$0xff]  }
  0x74   : > { %1550 = vmatpush3.bf16.msra.mxu1 %v1786_v5  ;;  %1531 = vmatprep.subr.bf16.mxu0 %v2067_v2  ;;  %v1803_v29 = vld [vmem:[#allocation7 + $0x70] sm:$0xff]   ;;  %v1804_v30 = vld [vmem:[#allocation7 + $0x68] sm:$0xff]   ;;  %v1805_v31 = vld [vmem:[#allocation7 + $0x60] sm:$0xff]  }
  0x75   : > { %1551 = vmatprep.subr.bf16.mxu1 %v2067_v2  ;;  %v1806_v32 = vld [vmem:[#allocation7 + $0x58] sm:$0xff]   ;;  %v1807_v33 = vld [vmem:[#allocation7 + $0x50] sm:$0xff]   ;;  %v1808_v35 = vld [vmem:[#allocation7 + $0x48] sm:$0xff]  }
  0x76   : > { %v604_v34 = vld [vmem:[#allocation2 + $0x4] sm:$0x8]  ;;  %v1809_v38 = vld [vmem:[#allocation7 + $0x40] sm:$0xff]   ;;  %v1812_v42 = vld [vmem:[#allocation9 + $0xb8] sm:$0xff]  }
  0x77   : > { %1532 = vmatpush3.bf16.msra.mxu0 %v1787_v6  ;;  %v1815_v43 = vld [vmem:[#allocation9 + $0x38] sm:$0xff]   ;;  %v1813_v44 = vld [vmem:[#allocation9 + $0xb0] sm:$0xff]   ;;  %v1814_v46 = vld [vmem:[#allocation9 + $0xa8] sm:$0xff]  }
  0x78   : > { %1552 = vmatpush3.bf16.msra.mxu1 %v1788_v7  ;;  %1533 = vmatprep.subr.bf16.mxu0 %v2067_v2  ;;  %v1817_v45 = vld [vmem:[#allocation9 + $0x30] sm:$0xff]   ;;  %v1816_v47 = vld [vmem:[#allocation9 + $0xa0] sm:$0xff]   ;;  %v1818_v48 = vld [vmem:[#allocation9 + $0x98] sm:$0xff]  }
  0x79   : > { %1553 = vmatprep.subr.bf16.mxu1 %v2067_v2  ;;  %v389_v19 = vld [vmem:[#allocation2 + $0x8] sm:$0xf]  ;;  %v1800_v21 = vld [vmem:[#allocation2 + $0xc] ss:$0 sps:$4 sm:$0x33]   ;;  %v1819_v49 = vld [vmem:[#allocation9 + $0x28] sm:$0xff]  }
  0x7a   : > { %v1379_v20 = vcombine.low %v388_v17, %v389_v19  ;;  %v417_v25 = vrot.slane %v1800_v21, 2  ;;  %v1398_v36 = vcombine.low %v604_v34, %v389_v19  ;;  %v1811_v37 = vld [vmem:[#allocation2 + $0xc] ss:$0 sps:$4 sm:$0x77]   ;;  %v1820_v50 = vld [vmem:[#allocation9 + $0x90] sm:$0xff]   ;;  %v1821_v51 = vld [vmem:[#allocation9 + $0x20] sm:$0xff]  }
  0x7b   : > { %1534 = vmatpush3.bf16.msra.mxu0 %v1789_v8  ;;  %v630_v40 = vrot.slane %v1811_v37, 3  ;;  %v1822_v52 = vld [vmem:[#allocation9 + $0x88] sm:$0xff]   ;;  %v1823_v53 = vld [vmem:[#allocation9 + $0x18] sm:$0xff]   ;;  %v1824_v54 = vld [vmem:[#allocation9 + $0x80] sm:$0xff]  }
  0x7c   : > { %1554 = vmatpush3.bf16.msra.mxu1 %v1790_v9  ;;  %1535 = vmatprep.subr.bf16.mxu0 %v2067_v2  ;;  %v416_v24 = vrot.slane %v1379_v20, 2  ;;  %v629_v39 = vrot.slane %v1398_v36, 3  ;;  %v1825_v55 = vld [vmem:[#allocation9 + $0x10] sm:$0xff]   ;;  %v1826_v56 = vld [vmem:[#allocation9 + $0x8] sm:$0xff]   ;;  %v1827_v57 = vld [vmem:[#allocation9] sm:$0xff]  }
  0x7d   : > { %1555 = vmatprep.subr.bf16.mxu1 %v2067_v2  ;;  %v1408_v6 = vld [vmem:[%s2453_s2] ss:$0 sm:$0xff]  ;;  %v761_v19 = vld [vmem:[#allocation3 + $0x4] sm:$0xc]  ;;  %v1834_v20 = vld [vmem:[#allocation10 + $0x28] sm:$0xff]  }
  0x7e   : > { %v418_v27 = vsel %vm415_vm1, %v416_v24, %v417_v25  ;;  %v631_v41 = vsel %vm628_vm2, %v629_v39, %v630_v40  ;;  %v1836_v24 = vld [vmem:[#allocation10 + $0x20] sm:$0xff]   ;;  %v1842_v34 = vld [vmem:[#allocation10 + $0x8] sm:$0xff]   ;;  %v1839_v37 = vld [vmem:[#allocation9 + $0x58] sm:$0xff]  }
  0x7f   : > { %1536 = vmatpush3.bf16.msra.mxu0 %v1791_v10  ;;  %v1844_v36 = vld [vmem:[#allocation10] sm:$0xff]   ;;  %v1843_v40 = vld [vmem:[#allocation9 + $0x48] sm:$0xff]  }
  0x80   : > { %1556 = vmatpush3.bf16.msra.mxu1 %v1792_v11  ;;  %1537 = vmatprep.subr.bf16.mxu0 %v2067_v2  ;;  %v970_v39 = vld [vmem:[#allocation3 + $0x4] sm:$0x8] }
  0x81   : > { %1557 = vmatprep.subr.bf16.mxu1 %v2067_v2 }
  0x83   : > { %1538 = vmatpush3.bf16.msra.mxu0 %v1793_v14 }
  0x84   : > { %1558 = vmatpush3.bf16.msra.mxu1 %v1794_v15  ;;  %1539 = vmatprep.subr.bf16.mxu0 %v2067_v2 }
  0x85   : > { %1559 = vmatprep.subr.bf16.mxu1 %v2067_v2 }
  0x87   : > { %1540 = vmatpush3.bf16.msra.mxu0 %v1795_v16  ;;  %v1828_v16 = vld [vmem:[#allocation10 + $0x38] sm:$0xff]  }
  0x88   : > { %1560 = vmatpush3.bf16.msra.mxu1 %v1796_v18  ;;  %1541 = vmatprep.subr.bf16.mxu0 %v2067_v2  ;;  %v1832_v18 = vld [vmem:[#allocation10 + $0x30] sm:$0xff]  }
  0x89   : > { %1561 = vmatprep.subr.bf16.mxu1 %v2067_v2 }
  0x8b   : > { %1542 = vmatpush3.bf16.msra.mxu0 %v1797_v22 }
  0x8c   : > { %1562 = vmatpush3.bf16.msra.mxu1 %v1798_v23  ;;  %1567 = vmatprep.subr.bf16.mxu0 %v2067_v2 }
  0x8d   : > { %1587 = vmatprep.subr.bf16.mxu1 %v2067_v2 }
  0x8e   : > { %1544 = vmatmul.mubr.bf16.vlgmr.msra.gmra.mxu0 %v418_v27  ;;  %v1831_v27 = vld [vmem:[#allocation9 + $0x78] sm:$0xff]  }
  0x8f   : > { %1564 = vmatmul.mubr.bf16.vlgmr.msra.gmra.mxu1 %v2321_v28  ;;  %1568 = vmatpush3.bf16.msra.mxu0 %v1802_v26 }
  0x90   : > { %1569 = vmatprep.subr.bf16.mxu0 %v2067_v2  ;;  %1583 = vmatprep.mubr.msk.bf16.mxu0 %vm2068_vm0, %v2067_v2 }
  0x91   : > { %1603 = vmatprep.mubr.msk.bf16.mxu1 %vm2068_vm0, %v2067_v2  ;;  %1588 = vmatpush3.bf16.msra.mxu1 %v1815_v43  ;;  %v1845_v43 = vld [vmem:[#allocation9 + $0x40] sm:$0xff]  }
  0x92   : > { %1589 = vmatprep.subr.bf16.mxu1 %v2067_v2 }
  0x93   : > { %1570 = vmatpush3.bf16.msra.mxu0 %v1803_v29 }
  0x94   : > { %1571 = vmatprep.subr.bf16.mxu0 %v2067_v2 }
  0x95   : > { %1590 = vmatpush3.bf16.msra.mxu1 %v1817_v45 }
  0x96   : > { %1591 = vmatprep.subr.bf16.mxu1 %v2067_v2 }
  0x97   : > { %1572 = vmatpush3.bf16.msra.mxu0 %v1804_v30  ;;  %v1838_v30 = vld [vmem:[#allocation10 + $0x18] sm:$0xff]  }
  0x98   : > { %1573 = vmatprep.subr.bf16.mxu0 %v2067_v2 }
  0x99   : > { %1592 = vmatpush3.bf16.msra.mxu1 %v1819_v49 }
  0x9a   : > { %1593 = vmatprep.subr.bf16.mxu1 %v2067_v2 }
  0x9b   : > { %1574 = vmatpush3.bf16.msra.mxu0 %v1805_v31  ;;  %v1833_v31 = vld [vmem:[#allocation9 + $0x70] sm:$0xff]  }
  0x9c   : > { %1575 = vmatprep.subr.bf16.mxu0 %v2067_v2 }
  0x9d   : > { %1594 = vmatpush3.bf16.msra.mxu1 %v1821_v51 }
  0x9e   : > { %1595 = vmatprep.subr.bf16.mxu1 %v2067_v2 }
  0x9f   : > { %1576 = vmatpush3.bf16.msra.mxu0 %v1806_v32  ;;  %v1840_v32 = vld [vmem:[#allocation10 + $0x10] sm:$0xff]  }
  0xa0   : > { %1577 = vmatprep.subr.bf16.mxu0 %v2067_v2 }
  0xa1   : > { %1596 = vmatpush3.bf16.msra.mxu1 %v1823_v53 }
  0xa2   : > { %1597 = vmatprep.subr.bf16.mxu1 %v2067_v2 }
  0xa3   : > { %1578 = vmatpush3.bf16.msra.mxu0 %v1807_v33  ;;  %v1835_v33 = vld [vmem:[#allocation9 + $0x68] sm:$0xff]  }
  0xa4   : > { %1579 = vmatprep.subr.bf16.mxu0 %v2067_v2 }
  0xa5   : > { %1598 = vmatpush3.bf16.msra.mxu1 %v1825_v55 }
  0xa6   : > { %1599 = vmatprep.subr.bf16.mxu1 %v2067_v2 }
  0xa7   : > { %1580 = vmatpush3.bf16.msra.mxu0 %v1808_v35  ;;  %v1837_v35 = vld [vmem:[#allocation9 + $0x60] sm:$0xff]  }
  0xa8   : > { %1581 = vmatprep.subr.bf16.mxu0 %v2067_v2 }
  0xa9   : > { %1600 = vmatpush3.bf16.msra.mxu1 %v1826_v56 }
  0xaa   : > { %1601 = vmatprep.subr.bf16.mxu1 %v2067_v2 }
  0xab   : > { %1582 = vmatpush3.bf16.msra.mxu0 %v1809_v38  ;;  %v1841_v38 = vld [vmem:[#allocation9 + $0x50] sm:$0xff]  }
  0xac   : > { %1607 = vmatprep.subr.bf16.mxu0 %v2067_v2 }
  0xad   : > { %1602 = vmatpush3.bf16.msra.mxu1 %v1827_v57 }
  0xae   : > { %1584 = vmatmul.mubr.bf16.vlgmr.msra.gmra.mxu0 %v631_v41  ;;  %1627 = vmatprep.subr.bf16.mxu1 %v2067_v2 }
  0xaf   : > { %1623 = vmatprep.mubr.msk.bf16.mxu0 %vm2068_vm0, %v2067_v2  ;;  %1608 = vmatpush3.bf16.msra.mxu0 %v1812_v42 }
  0xb0   : > { %1609 = vmatprep.subr.bf16.mxu0 %v2067_v2 }
  0xb3   : > { %1610 = vmatpush3.bf16.msra.mxu0 %v1813_v44 }
  0xb4   : > { %1611 = vmatprep.subr.bf16.mxu0 %v2067_v2 }
  0xb7   : > { %1612 = vmatpush3.bf16.msra.mxu0 %v1814_v46 }
  0xb8   : > { %1613 = vmatprep.subr.bf16.mxu0 %v2067_v2 }
  0xbb   : > { %1614 = vmatpush3.bf16.msra.mxu0 %v1816_v47 }
  0xbc   : > { %1615 = vmatprep.subr.bf16.mxu0 %v2067_v2 }
  0xbf   : > { %1616 = vmatpush3.bf16.msra.mxu0 %v1818_v48 }
  0xc0   : > { %1617 = vmatprep.subr.bf16.mxu0 %v2067_v2 }
  0xc3   : > { %1618 = vmatpush3.bf16.msra.mxu0 %v1820_v50 }
  0xc4   : > { %1619 = vmatprep.subr.bf16.mxu0 %v2067_v2 }
  0xc7   : > { %1620 = vmatpush3.bf16.msra.mxu0 %v1822_v52 }
  0xc8   : > { %1621 = vmatprep.subr.bf16.mxu0 %v2067_v2 }
  0xcb   : > { %1622 = vmatpush3.bf16.msra.mxu0 %v1824_v54 }
  0xcc   : > { %1647 = vmatprep.subr.bf16.mxu0 %v2067_v2 }
 0x14e   : > { %v502_v58 = vpop.f32.mrf.mxu0 }
 0x14f   : > { %v597_v59 = vpop.f32.mrf.mxu1 }
 0x150   : > { %v1545_v60 = vpop.f32.mrf.mxu0  ;;  %v598_v3 = vadd.f32 %v597_v59, %v502_v58 }
 0x151   : > { %v1565_v61 = vpop.f32.mrf.mxu1  ;;  %v1439_v60 = vld [vmem:[%s2455_s4] ss:$0 sm:$0xff] }
 0x152   : > { %v505_v62 = vpop.f32.mrf.mxu0 }
 0x153   : > { %v600_v63 = vpop.f32.mrf.mxu1 }
 0x154   : > { %v1546_v0 = vpop.f32.mrf.mxu0  ;;  %v601_v8 = vadd.f32 %v600_v63, %v505_v62 }
 0x155   : > { %v1566_v1 = vpop.f32.mrf.mxu1 }
 0x16e   : > { %v715_v4 = vpop.f32.mrf.mxu0 }
 0x16f   : > { %v722_v5 = vadd.f32 %v715_v4, %v598_v3 }
 0x170   : > { %v1585_v7 = vpop.f32.mrf.mxu0 }
 0x171   : > { %v731_v10 = vadd.f32 %v1408_v6, %v722_v5 }
 0x172   : > { %v718_v9 = vpop.f32.mrf.mxu0 }
 0x173   : > { %v723_v11 = vadd.f32 %v718_v9, %v601_v8  ;;  %v733_v14 = vmax.f32 %v731_v10, 0.0 }
 0x174   : > { %v1586_v12 = vpop.f32.mrf.mxu0 }
 0x175   : > { %v732_v13 = vadd.f32 %v1408_v6, %v723_v11 }
 0x177   : > { %v734_v15 = vmax.f32 %v732_v13, 0.0 }
 0x179   : > { %v735_v17 = vpack.c.bf16 %v734_v15, %v733_v14 }
 0x17b   : > { %1463 = vst [vmem:[#allocation3 + $0x8] sm:$0xff] %v735_v17   ;;  %1624 = vmatmul.mubr.bf16.vlgmr.msra.gmra.mxu0 %v735_v17 }
 0x17c   : > { %1648 = vmatpush3.bf16.msra.mxu0 %v1828_v16  ;;  %1663 = vmatprep.mubr.msk.bf16.mxu0 %vm2068_vm0, %v2067_v2 }
 0x17d   : > { %1649 = vmatprep.subr.bf16.mxu0 %v2067_v2 }
 0x180   : > { %1650 = vmatpush3.bf16.msra.mxu0 %v1832_v18 }
 0x181   : > { %1651 = vmatprep.subr.bf16.mxu0 %v2067_v2 }
 0x182   : > { %v762_v21 = vld [vmem:[#allocation3 + $0x8] sm:$0xf]  ;;  %v1830_v23 = vld [vmem:[#allocation3 + $0xc] ss:$0 sps:$4 sm:$0x33]  }
 0x183   : > { %v1411_v22 = vcombine.low %v761_v19, %v762_v21  ;;  %v789_v26 = vrot.slane %v1830_v23, 2  ;;  %v1429_v41 = vcombine.low %v970_v39, %v762_v21  ;;  %v1847_v42 = vld [vmem:[#allocation3 + $0xc] ss:$0 sps:$4 sm:$0x77]  }
 0x184   : > { %1652 = vmatpush3.bf16.msra.mxu0 %v1834_v20  ;;  %v995_v45 = vrot.slane %v1847_v42, 3 }
 0x185   : > { %v788_v25 = vrot.slane %v1411_v22, 2  ;;  %1653 = vmatprep.subr.bf16.mxu0 %v2067_v2  ;;  %v994_v44 = vrot.slane %v1429_v41, 3 }
 0x187   : > { %v790_v29 = vsel %vm415_vm1, %v788_v25, %v789_v26  ;;  %v996_v46 = vsel %vm628_vm2, %v994_v44, %v995_v45 }
 0x188   : > { %1604 = vmatmul.mubr.bf16.vlgmr.msra.gmra.mxu1 %v790_v29  ;;  %1654 = vmatpush3.bf16.msra.mxu0 %v1836_v24 }
 0x189   : > { %1628 = vmatpush3.bf16.msra.mxu1 %v1831_v27  ;;  %1655 = vmatprep.subr.bf16.mxu0 %v2067_v2 }
 0x18a   : > { %1629 = vmatprep.subr.bf16.mxu1 %v2067_v2  ;;  %1643 = vmatprep.mubr.msk.bf16.mxu1 %vm2068_vm0, %v2067_v2 }
 0x18c   : > { %1656 = vmatpush3.bf16.msra.mxu0 %v1838_v30 }
 0x18d   : > { %1630 = vmatpush3.bf16.msra.mxu1 %v1833_v31  ;;  %1657 = vmatprep.subr.bf16.mxu0 %v2067_v2 }
 0x18e   : > { %1631 = vmatprep.subr.bf16.mxu1 %v2067_v2 }
 0x190   : > { %1658 = vmatpush3.bf16.msra.mxu0 %v1840_v32 }
 0x191   : > { %1632 = vmatpush3.bf16.msra.mxu1 %v1835_v33  ;;  %1659 = vmatprep.subr.bf16.mxu0 %v2067_v2 }
 0x192   : > { %1633 = vmatprep.subr.bf16.mxu1 %v2067_v2 }
 0x194   : > { %1660 = vmatpush3.bf16.msra.mxu0 %v1842_v34 }
 0x195   : > { %1634 = vmatpush3.bf16.msra.mxu1 %v1837_v35  ;;  %1661 = vmatprep.subr.bf16.mxu0 %v2067_v2 }
 0x196   : > { %1635 = vmatprep.subr.bf16.mxu1 %v2067_v2 }
 0x198   : > { %1662 = vmatpush3.bf16.msra.mxu0 %v1844_v36 }
 0x199   : > { %1636 = vmatpush3.bf16.msra.mxu1 %v1839_v37 }
 0x19a   : > { %1637 = vmatprep.subr.bf16.mxu1 %v2067_v2 }
 0x19b   : > { %1664 = vmatmul.mubr.bf16.vlgmr.msra.gmra.mxu0 %v2321_v28 }
 0x19d   : > { %1638 = vmatpush3.bf16.msra.mxu1 %v1841_v38 }
 0x19e   : > { %1639 = vmatprep.subr.bf16.mxu1 %v2067_v2 }
 0x1a1   : > { %1640 = vmatpush3.bf16.msra.mxu1 %v1843_v40 }
 0x1a2   : > { %1641 = vmatprep.subr.bf16.mxu1 %v2067_v2  ;;  %v1440_v2 = vld [vmem:[%s2457_s6] ss:$0 sm:$0xff] }
 0x1a5   : > { %1642 = vmatpush3.bf16.msra.mxu1 %v1845_v43 }
 0x1a8   : > { %1644 = vmatmul.mubr.bf16.vlgmr.msra.gmra.mxu1 %v996_v46 }
 0x23b   : > { %v963_v47 = vpop.f32.mrf.mxu0 }
 0x23d   : > { %v1625_v48 = vpop.f32.mrf.mxu0 }
 0x23f   : > { %v966_v28 = vpop.f32.mrf.mxu0 }
 0x241   : > { %v1626_v49 = vpop.f32.mrf.mxu0 }
 0x248   : > { %v874_v50 = vpop.f32.mrf.mxu1 }
 0x249   : > { %v964_v58 = vadd.f32 %v963_v47, %v874_v50 }
 0x24a   : > { %v1605_v51 = vpop.f32.mrf.mxu1 }
 0x24c   : > { %v877_v52 = vpop.f32.mrf.mxu1 }
 0x24d   : > { %v967_v63 = vadd.f32 %v966_v28, %v877_v52 }
 0x24e   : > { %v1606_v53 = vpop.f32.mrf.mxu1 }
 0x25b   : > { %v1205_v54 = vpop.f32.mrf.mxu0 }
 0x25c   : > { %v1206_v0 = vadd.f32 %v1440_v2, %v1205_v54 }
 0x25d   : > { %v1665_v55 = vpop.f32.mrf.mxu0 }
 0x25f   : > { %v1208_v56 = vpop.f32.mrf.mxu0 }
 0x260   : > { %v1209_v10 = vadd.f32 %v1440_v2, %v1208_v56 }
 0x261   : > { %v1666_v57 = vpop.f32.mrf.mxu0 }
 0x268   : > { %v1080_v59 = vpop.f32.mrf.mxu1 }
 0x269   : > { %v1087_v61 = vadd.f32 %v1080_v59, %v964_v58 }
 0x26a   : > { %v1645_v62 = vpop.f32.mrf.mxu1 }
 0x26b   : > { %v1096_v1 = vadd.f32 %v1439_v60, %v1087_v61 }
 0x26c   : > { %v1083_v3 = vpop.f32.mrf.mxu1 }
 0x26d   : > { %v1098_v4 = vmax.f32 %v1096_v1, 0.0  ;;  %v1088_v5 = vadd.f32 %v1083_v3, %v967_v63 }
 0x26e   : > { %v1646_v6 = vpop.f32.mrf.mxu1 }
 0x26f   : > { %v1212_v7 = vadd.f32 %v1206_v0, %v1098_v4  ;;  %v1097_v8 = vadd.f32 %v1439_v60, %v1088_v5 }
 0x271   : > { %v1214_v9 = vmax.f32 %v1212_v7, 0.0  ;;  %v1099_v11 = vmax.f32 %v1097_v8, 0.0 }
 0x273   : > { %1216 = vst [vmem:[%s2295_s7] sm:$0xff] %v1214_v9  ;;  %v1213_v12 = vadd.f32 %v1209_v10, %v1099_v11  ;;  %1221 = sbr.rel (%p1449_p1) target bundleno = 634 (0x27a), region = 72 }
 0x275   : > { %v1215_v13 = vmax.f32 %v1213_v12, 0.0 }
 0x277   : > { %1217 = vst [vmem:[%s2295_s7 + $0x8] sm:$0xff] %v1215_v13 }
 0x278   : > { %v1222_v14 = vld [vmem:[#allocation2 + $0xc] sm:$0xc]  ;;  %v1224_v15 = vld [vmem:[#allocation3 + $0xc] sm:$0xc] }
 0x279   : > { %1223 = vst [vmem:[#allocation2 + $0x4] sm:$0xc] %v1222_v14  ;;  %1225 = vst [vmem:[#allocation3 + $0x4] sm:$0xc] %v1224_v15 }
 0x27a PF: > { %s1451_s1 = sshll.u32 %s2042_s27, 1  ;;  %s1452_s10 = sshll.u32 %s2046_s28, 2 }
 0x27b   : > { %s1242_s18 = sshll.u32 %s2295_s7, 4  ;;  %s1239_s19 = sadd.s32 %s1452_s10, %s1451_s1  ;;  %s2393_s18 = int_to_ptr.vmem [resolvable:$true] %s1242_s18 }
 0x27c   : > { %s1453_s29 = sshll.u32 %s1239_s19, 7  ;;  %s2492_s17 = sld [smem:[#allocation25_spill]] }
 0x27d   : > { %s1227_s3 = scalar_lea.sflag [#allocation6], %s2276_s23  ;;  %s1954_s11 = scalar_lea.vmem %s2393_s18, 256 }
 0x27e   : > { %p1955_p4 = scmp.ne.s32.totalorder %s2393_s18, %s1954_s11  ;;  %s2069_s27 = smov [#allocation12]  }
 0x27f   : > { %s1958_s28 = sshll.u32 %s2069_s27, 4  ;;  %s1959_s28 = int_to_ptr.vmem [resolvable:$false] %s1958_s28 }
 0x280   : > { %p1956_p3 = pnand %p1955_p4, %p2236_p13  ;;  %s1960_s7 = scalar_lea.vmem %s1959_s28, 512 }
 0x281   : > { %p1961_p5 = scmp.lt.s32.totalorder %s2393_s18, %s1959_s28  ;;  %p1962_p7 = scmp.lt.s32.totalorder %s1960_s7, %s1954_s11 }
 0x282   : > { %s2398_s14 = scalar_lea.hbm %s2492_s17, %s1453_s29  ;;  %p1957_p2 = pneg %p1956_p3 }
 0x283   : > { %p1963_p6 = por %p1962_p7, %p1961_p5 }
 0x285   : > { %p1964_p11 = pnand %p1963_p6, %p1957_p2 }
 0x287   : > { %1967 = shalt.err (!%p1964_p11)
}
 0x288   : > { %s1968_s13 = scalar_lea.hbm %s2398_s14, 256  ;;  %s1972_s12 = scalar_lea.hbm %s2492_s17, 1024 }
 0x289   : > { %p1969_p9 = scmp.ne.s32.totalorder %s2398_s14, %s1968_s13  ;;  %p1973_p0 = scmp.lt.s32.totalorder %s2398_s14, %s2492_s17 }
 0x28a   : > { %p1974_p8 = scmp.lt.s32.totalorder %s1972_s12, %s1968_s13 }
 0x28b   : > { %p1970_p12 = pnand %p1969_p9, %p2236_p13 }
 0x28c   : > { %p1975_p1 = por %p1974_p8, %p1973_p0 }
 0x28d   : > { %p1971_p10 = pneg %p1970_p12 }
 0x28f   : > { %p1976_p4 = pnand %p1975_p1, %p1971_p10 }
 0x291   : > { %1979 = shalt.err (!%p1976_p4)
}
 0x292   : > { %s2070_s10 = smov 128   ;;  %s2071_s19 = smov 8  }
 0x293   : > { %1681 = dma.vmem_to_hbm [thread:$0]  (%p2236_p13), %s2393_s18, 256, %s2398_s14, %s1227_s3, %s2070_s10, %s2070_s10, %s2071_s19  }
 0x294 PF: > { %s2493_s29 = sld [smem:[#allocation17_spill]]  ;;  %p1708_p3 = scmp.ge.s32.totalorder %s2058_s8, 2 }
 0x295   : > { %s2494_s24 = sld [smem:[#allocation19_spill]] }
 0x29a   : > { %s1257_s22 = sand.u32 1, %s2493_s29  }
 0x29b   : > { %p2495_p2 = scmp.ne.s32.totalorder %s2494_s24, 0  ;;  %s1258_s11 = scalar_lea.sflag [#allocation6], %s1257_s22 }
 0x29d   : > { %p1698_p5 = pnand %p1708_p3, %p2495_p2 }
 0x29f   : > { %p1699_p7 = pneg %p1698_p5 }
 0x2a1   : > { %2025 = dma.done.wait (%p1699_p7), %s1258_s11, 256  }
 0x2a2   : > { %2027 = vsyncadd (%p1699_p7), %s1258_s11, 4294967040  ;;  %s25_s8 = sadd.s32 1, %s2058_s8   ;;  %s2496_s27 = sld [smem:[#allocation18_spill]] }
 0x2a3   : > { %p22_p6 = scmp.ge.s32.totalorder %s25_s8, 6   ;;  %s2497_s29 = sld [smem:[#allocation20_spill]] }
 0x2a4   : > { %s2498_s24 = smov %s2034_s25  ;;  %s2499_s25 = smov %s2038_s26 }
 0x2a5   : > { %s2500_s26 = smov %s2253_s5  ;;  %s2501_s28 = smov %s2054_s30 }
 0x2a6   : > { %s2502_s30 = smov %s2508_s20  ;;  %24 = sbr.rel (!%p22_p6) target bundleno = 14 (0xe), region = 113 }
 0x2ab   :  { %1263 = vsyncpa [#allocation5], 1 }
 0x2ac   :  { %1265 = vsyncpa [#allocation5 + $0x1], 1 }
 0x2ad   :  { %1266 = vsyncpa [#allocation8], 1 }
 0x2ae   :  { %1267 = vsyncpa [#allocation11], 1 }
 0x2af   :  { %1268 = vsyncpa [#allocation6], 1 }
 0x2b0   :  { %1270 = vsyncpa [#allocation6 + $0x1], 1 }

// kernel: tpu_custom_call.1
= control target key start
LH: loop header
LB: loop body
LE: loop exit
PB: predicated region body
PF: predicated region fallthrough
CT: control target
= control target key end

     0   :  { %s2451_s0 = inlined_call_operand.hbm [shape: bf16[2,32,128], index: 0, kind: input, shape index: {}]   ;;  %s2452_s1 = inlined_call_operand.hbm [shape: bf16[384,128], index: 1, kind: input, shape index: {}]   ;;  %s2453_s2 = inlined_call_operand.vmem [shape: f32[1,128], index: 2, kind: input, shape index: {}]   ;;  %s2454_s3 = inlined_call_operand.hbm [shape: bf16[384,128], index: 3, kind: input, shape index: {}]   ;;  %s2455_s4 = inlined_call_operand.vmem [shape: f32[1,128], index: 4, kind: input, shape index: {}]   ;;  %s2456_s5 = inlined_call_operand.hbm [shape: bf16[128,128], index: 5, kind: input, shape index: {}]   ;;  %s2457_s6 = inlined_call_operand.vmem [shape: f32[1,128], index: 6, kind: input, shape index: {}]   ;;  %s2458_s7 = inlined_call_operand.hbm [shape: f32[2,32,128], index: 7, kind: output, shape index: {}]  }
   0x1   :  { %2468 = sst [smem:[#allocation22_spill]] %s2452_s1 }
   0x2   :  { %2469 = sst [smem:[#allocation23_spill]] %s2454_s3 }
   0x3   :  { %2470 = sst [smem:[#allocation24_spill]] %s2456_s5 }
   0x4   :  { %2471 = sst [smem:[#allocation25_spill]] %s2458_s7 }
   0x5   :  { %12 = vsyncpa [#allocation5], 0 }
   0x6   :  { %14 = vsyncpa [#allocation5 + $0x1], 0 }
   0x7   :  { %15 = vsyncpa [#allocation8], 0 }
   0x8   :  { %16 = vsyncpa [#allocation11], 0 }
   0x9   :  { %17 = vsyncpa [#allocation6], 0 }
   0xa   :  { %19 = vsyncpa [#allocation6 + $0x1], 0  ;;  %s2112_s24 = smov 0   ;;  %s2114_s25 = smov 0  }
   0xb   :  { %s2116_s26 = smov 0   ;;  %s2118_s27 = smov 0  }
   0xc   :  { %s2120_s28 = smov 0   ;;  %s2122_s29 = smov 0  }
   0xd   :  { %s2124_s30 = smov 0   ;;  %s2126_s8 = smov 0  }
   0xe LB: > { %2472 = sst [smem:[#allocation17_spill]] %s2030_s24  ;;  %s1361_s9 = sadd.s32 4294967295, %s2058_s8   ;;  %s2058_s8 = sphi %s2126_s8, %s25_s8   ;;  %s2054_s30 = sphi %s2124_s30, %s2502_s30   ;;  %s2050_s29 = sphi %s2122_s29, %s2497_s29   ;;  %s2046_s28 = sphi %s2120_s28, %s2501_s28   ;;  %s2042_s27 = sphi %s2118_s27, %s2496_s27   ;;  %s2038_s26 = sphi %s2116_s26, %s2500_s26   ;;  %s2034_s25 = sphi %s2114_s25, %s2499_s25   ;;  %s2030_s24 = sphi %s2112_s24, %s2498_s24  }
   0xf   : > { %2473 = sst [smem:[#allocation18_spill]] %s2050_s29  ;;  %s1362_s10 = sadd.s32 4294967294, %s2058_s8  }
  0x10   : > { %p59_p0 = scmp.ne.s32.totalorder %s2034_s25, %s2030_s24  ;;  %p2156_p1 = scmp.eq.s32.totalorder %s1361_s9, 0 }
  0x11   : > { %p2160_p2 = scmp.eq.s32.totalorder %s1361_s9, 3  ;;  %p217_p3 = scmp.eq.s32.totalorder %s1362_s10, 3 }
  0x12   : > { %p2166_p4 = por %p2156_p1, %p59_p0  ;;  %p1363_p5 = scmp.ge.s32.totalorder %s2058_s8, 1 }
  0x13   : > { %p2171_p6 = por %p217_p3, %p59_p0  ;;  %p224_p7 = scmp.lt.s32.totalorder %s2058_s8, 5 }
  0x14   : > { %s2060_s16 = smov [#allocation7]   ;;  %s2061_s19 = smov [#allocation9]  }
  0x15   : > { %s2477_s14 = scalar_select %p2171_p6, 1, 0 }
  0x16   : > { %p2176_p8 = pnand %p1363_p5, %p224_p7  ;;  %s236_s17 = sshll.u32 %s2060_s16, 4  ;;  %s237_s17 = int_to_ptr.vmem [resolvable:$true] %s236_s17 }
  0x17   : > { %2478 = sst [smem:[#allocation19_spill]] %s2477_s14  ;;  %s252_s20 = sshll.u32 %s2061_s19, 4  ;;  %s253_s20 = int_to_ptr.vmem [resolvable:$true] %s252_s20 }
  0x18   : > { %p1683_p9 = pneg %p2176_p8  ;;  %s2062_s21 = smov [#allocation10]  }
  0x19   : > { %s268_s22 = sshll.u32 %s2062_s21, 4  ;;  %s1859_s23 = scalar_lea.vmem %s237_s17, 3072  ;;  %s269_s22 = int_to_ptr.vmem [resolvable:$true] %s268_s22 }
  0x1a   : > { %p2184_p10 = pnand %p1683_p9, %p2156_p1  ;;  %p1860_p12 = scmp.ne.s32.totalorder %s237_s17, %s1859_s23 }
  0x1b   : > { %p1867_p3 = scmp.lt.s32.totalorder %s237_s17, %s237_s17  ;;  %p1868_p5 = scmp.lt.s32.totalorder %s1859_s23, %s1859_s23 }
  0x1c   : > { %p1850_p11 = pneg %p2184_p10 }
  0x1d   : > { %p1869_p7 = por %p1868_p5, %p1867_p3 }
  0x1e   : > { %p1862_p13 = pnand %p1860_p12, %p1850_p11 }
  0x20   : > { %p1863_p0 = pneg %p1862_p13 }
  0x22   : > { %p1870_p9 = pnand %p1869_p7, %p1863_p0 }
  0x24   : > { %1873 = shalt.err (!%p1870_p9)
}
  0x25   : > { %s2460_s9 = smov 64   ;;  %s2461_s10 = smov 4  }
  0x26   : > { %s2481_s1 = sld [smem:[#allocation22_spill]]  ;;  %s1885_s21 = scalar_lea.vmem %s253_s20, 3072 }
  0x27   : > { %p1886_p12 = scmp.ne.s32.totalorder %s253_s20, %s1885_s21  ;;  %p1893_p0 = scmp.lt.s32.totalorder %s253_s20, %s253_s20 }
  0x28   : > { %p1894_p5 = scmp.lt.s32.totalorder %s1885_s21, %s1885_s21 }
  0x29   : > { %p1888_p13 = pnand %p1886_p12, %p1850_p11 }
  0x2a   : > { %p1895_p7 = por %p1894_p5, %p1893_p0 }
  0x2b   : > { %p1889_p3 = pneg %p1888_p13 }
  0x2c   : > { %1686 = dma.hbm_to_vmem [thread:$0]  (!%p2184_p10), %s2481_s1, 3072, %s237_s17, [#allocation8], %s2460_s9, %s2460_s9, %s2461_s10  }
  0x2d   : > { %p1896_p9 = pnand %p1895_p7, %p1889_p3 }
  0x2f   : > { %1899 = shalt.err (!%p1896_p9)
}
  0x30   : > { %s2482_s3 = sld [smem:[#allocation23_spill]]  ;;  %s1911_s17 = scalar_lea.vmem %s269_s22, 1024 }
  0x31   : > { %p1912_p6 = scmp.ne.s32.totalorder %s269_s22, %s1911_s17  ;;  %p1919_p0 = scmp.lt.s32.totalorder %s269_s22, %s269_s22 }
  0x32   : > { %p1920_p3 = scmp.lt.s32.totalorder %s1911_s17, %s1911_s17 }
  0x33   : > { %p1914_p12 = pnand %p1912_p6, %p1850_p11 }
  0x34   : > { %p1921_p5 = por %p1920_p3, %p1919_p0 }
  0x35   : > { %p1915_p13 = pneg %p1914_p12 }
  0x36   : > { %1689 = dma.hbm_to_vmem [thread:$0]  (!%p2184_p10), %s2482_s3, 3072, %s253_s20, [#allocation8], %s2460_s9, %s2460_s9, %s2461_s10  }
  0x37   : > { %p1922_p7 = pnand %p1921_p5, %p1915_p13 }
  0x39   : > { %1925 = shalt.err (!%p1922_p7)
}
  0x3a   : > { %s2483_s5 = sld [smem:[#allocation24_spill]]  ;;  %s34_s18 = sadd.s32 1, %s2050_s29 }
  0x3b   : > { %p35_p6 = scmp.ge.s32.totalorder %s34_s18, 2  ;;  %s37_s20 = sadd.s32 1, %s2054_s30 }
  0x3c   : > { %s46_s19 = sadd.s32 1, %s2038_s26  ;;  %p53_p11 = scmp.ne.s32.totalorder %s2038_s26, %s2034_s25 }
  0x3d   : > { %s2504_s18 = smov (%p35_p6, %s34_s18), 0  ;;  %s2506_s20 = smov (!%p35_p6, %s37_s20), %s2054_s30 }
  0x3e   : > { %2484 = sst [smem:[#allocation20_spill]] %s2504_s18  ;;  %s42_s21 = ssub.s32 %s2050_s29, %s2504_s18 }
  0x3f   : > { %p54_p9 = scmp.eq.s32.totalorder %s2058_s8, 0  ;;  %p39_p12 = scmp.ge.s32.totalorder %s2506_s20, 2 }
  0x40   : > { %1692 = dma.hbm_to_vmem [thread:$0]  (!%p2184_p10), %s2483_s5, 1024, %s269_s22, [#allocation11], %s2460_s9, %s2460_s9, %s2461_s10  }
  0x41   : > { %p2236_p13 = por %p2160_p2, %p53_p11  ;;  %p2240_p10 = por %p54_p9, %p53_p11 }
  0x42   : > { %p1704_p0 = scmp.lt.s32.totalorder %s2058_s8, 4  ;;  %s2508_s20 = smov (%p39_p12, %s2506_s20), 0 }
  0x43   : > { %s2485_s23 = scalar_select %p2236_p13, 1, 0 }
  0x44   : > { %s285_s17 = sand.u32 1, %s2038_s26   ;;  %s1369_s14 = sshll.u32 %s2050_s29, 1 }
  0x45   : > { %2486 = sst [smem:[#allocation21_spill]] %s2485_s23  ;;  %s41_s16 = ssub.s32 %s2054_s30, %s2508_s20 }
  0x46   : > { %s43_s9 = sor.u32 %s42_s21, %s41_s16  ;;  %s1368_s10 = sshll.u32 %s285_s17, 3 }
  0x47   : > { %p44_p3 = scmp.eq.s32.totalorder %s43_s9, 0  ;;  %s1370_s12 = sshll.u32 %s2054_s30, 2 }
  0x48   : > { %s289_s1 = scalar_lea.vmem [#allocation4], %s1368_s10  ;;  %s295_s18 = sadd.s32 %s1370_s12, %s1369_s14 }
  0x49   : > { %s298_s3 = sshll.u32 %s289_s1, 4  ;;  %s1371_s24 = sshll.u32 %s295_s18, 6  ;;  %s299_s3 = int_to_ptr.vmem [resolvable:$true] %s298_s3 }
  0x4a   : > { %s2253_s5 = scalar_select %p44_p3, %s2038_s26, %s46_s19  }
  0x4b   : > { %p2259_p2 = pnand %p1704_p0, %p2240_p10  ;;  %s297_s21 = scalar_lea.hbm %s2451_s0, %s1371_s24 }
  0x4c   : > { %s286_s9 = scalar_lea.sflag [#allocation5], %s285_s17  ;;  %s1939_s1 = scalar_lea.vmem %s299_s3, 128 }
  0x4d   : > { %p1928_p5 = pneg %p2259_p2  ;;  %p1940_p7 = scmp.ne.s32.totalorder %s299_s3, %s1939_s1 }
  0x4e   : > { %s2065_s10 = smov [#allocation4]  }
  0x4f   : > { %p1942_p6 = pnand %p1940_p7, %p1928_p5  ;;  %s1944_s18 = sshll.u32 %s2065_s10, 4  ;;  %s1945_s18 = int_to_ptr.vmem [resolvable:$false] %s1944_s18 }
  0x50   : > { %s1946_s19 = scalar_lea.vmem %s1945_s18, 256  ;;  %p1947_p9 = scmp.lt.s32.totalorder %s299_s3, %s1945_s18 }
  0x51   : > { %p1943_p11 = pneg %p1942_p6  ;;  %p1948_p12 = scmp.lt.s32.totalorder %s1946_s19, %s1939_s1 }
  0x53   : > { %p1949_p10 = por %p1948_p12, %p1947_p9 }
  0x55   : > { %p1950_p0 = pnand %p1949_p10, %p1943_p11 }
  0x57   : > { %1953 = shalt.err (!%p1950_p0)
}
  0x58   : > { %s2489_s29 = smov 4   ;;  %s2490_s24 = smov 64  }
  0x59   : > { %1696 = dma.hbm_to_vmem [thread:$0]  (!%p2259_p2), %s297_s21, 128, %s299_s3, %s286_s9, %s2490_s24, %s2490_s24, %s2489_s29  }
  0x5a   : > { %310 = sbr.rel (%p2176_p8) target bundleno = 660 (0x294), region = 48  ;;  %s2276_s23 = sand.u32 (!%p2176_p8), 1, %s2034_s25  }
  0x5b   : > { %s1373_s22 = sshll.u32 (!%p2176_p8), %s2276_s23, 3  ;;  %s313_s17 = scalar_lea.sflag (!%p2176_p8), [#allocation5], %s2276_s23 }
  0x5c   : > { %s2280_s14 = scalar_lea.vmem (!%p2176_p8), [#allocation4], %s1373_s22 }
  0x5f   : > { %2013 = dma.done.wait (%p2166_p4), %s313_s17, 128  }
  0x60   : > { %2015 = vsyncadd (%p2166_p4), %s313_s17, 4294967168 }
  0x61   : > { %2017 = dma.done.wait (%p2156_p1), [#allocation8], 6144  }
  0x62   : > { %2019 = vsyncadd (%p2156_p1), [#allocation8], 4294961152 }
  0x63   : > { %2021 = dma.done.wait (%p2156_p1), [#allocation11], 1024  }
  0x64   : > { %2023 = vsyncadd (%p2156_p1), [#allocation11], 4294966272  ;;  %s1377_s3 = sshll.u32 %s2276_s23, 4  ;;  %p1378_p8 = scmp.ne.s32.totalorder %s2042_s27, 0 }
  0x65   : > { %s2295_s7 = scalar_lea.vmem [#allocation12], %s1377_s3 }
  0x66   : > { %365 = sbr.rel (%p1378_p8) target bundleno = 109 (0x6d), region = 68 }
  0x6b   : > { %v2066_v0 = vmov 0  }
  0x6c   : > { %366 = vst [vmem:[#allocation2 + $0x4] sm:$0xc] %v2066_v0  ;;  %367 = vst [vmem:[#allocation3 + $0x4] sm:$0xc] %v2066_v0 }
  0x6d PF: > { %v1783_v1 = vld [vmem:[#allocation7 + $0x38] sm:$0xff]   ;;  %v2067_v2 = vmov 0.0   ;;  %v1785_v4 = vld [vmem:[#allocation7 + $0x30] sm:$0xff]   ;;  %vm2068_vm0 = vmmov 0   ;;  %v1787_v6 = vld [vmem:[#allocation7 + $0x28] sm:$0xff]   ;;  %vm415_vm1 = vcmask 1045504  }
  0x6e   : > { %1527 = vmatprep.subr.bf16.mxu0 %v2067_v2  ;;  %1547 = vmatprep.subr.bf16.mxu1 %v2067_v2  ;;  %v1784_v3 = vld [vmem:[#allocation7 + $0xb8] sm:$0xff]   ;;  %v1786_v5 = vld [vmem:[#allocation7 + $0xb0] sm:$0xff]   ;;  %v1788_v7 = vld [vmem:[#allocation7 + $0xa8] sm:$0xff]   ;;  %vm628_vm2 = vcmask 1044480   ;;  %p1449_p1 = scmp.ge.s32.totalorder %s2042_s27, 1 }
  0x6f   : > { %1528 = vmatpush3.bf16.msra.mxu0 %v1783_v1  ;;  %1543 = vmatprep.mubr.msk.bf16.mxu0 %vm2068_vm0, %v2067_v2  ;;  %v1789_v8 = vld [vmem:[#allocation7 + $0x20] sm:$0xff]   ;;  %v1791_v10 = vld [vmem:[#allocation7 + $0x18] sm:$0xff]   ;;  %v1793_v14 = vld [vmem:[#allocation7 + $0x10] sm:$0xff]  }
  0x70   : > { %1548 = vmatpush3.bf16.msra.mxu1 %v1784_v3  ;;  %1529 = vmatprep.subr.bf16.mxu0 %v2067_v2  ;;  %v1790_v9 = vld [vmem:[#allocation7 + $0xa0] sm:$0xff]   ;;  %v1792_v11 = vld [vmem:[#allocation7 + $0x98] sm:$0xff]   ;;  %v1794_v15 = vld [vmem:[#allocation7 + $0x90] sm:$0xff]  }
  0x71   : > { %1549 = vmatprep.subr.bf16.mxu1 %v2067_v2  ;;  %1563 = vmatprep.mubr.msk.bf16.mxu1 %vm2068_vm0, %v2067_v2  ;;  %v368_v12 = vld [vmem:[%s2280_s14] sm:$0xf]  ;;  %v369_v13 = vld [vmem:[%s2280_s14 + $0x4] sm:$0xf]  ;;  %v1795_v16 = vld [vmem:[#allocation7 + $0x8] sm:$0xff]  }
  0x72   : > { %370 = vst [vmem:[#allocation2 + $0x8] sm:$0xf] %v368_v12  ;;  %371 = vst [vmem:[#allocation2 + $0xc] sm:$0xf] %v369_v13  ;;  %v1796_v18 = vld [vmem:[#allocation7 + $0x88] sm:$0xff]   ;;  %v1797_v22 = vld [vmem:[#allocation7] sm:$0xff]   ;;  %v2321_v28 = vcombine.low %v368_v12, %v369_v13 }
  0x73   : > { %1530 = vmatpush3.bf16.msra.mxu0 %v1785_v4  ;;  %v388_v17 = vld [vmem:[#allocation2 + $0x4] sm:$0xc]  ;;  %v1798_v23 = vld [vmem:[#allocation7 + $0x80] sm:$0xff]   ;;  %v1802_v26 = vld [vmem:[#allocation7 + $0x78] sm:$0xff]  }
  0x74   : > { %1550 = vmatpush3.bf16.msra.mxu1 %v1786_v5  ;;  %1531 = vmatprep.subr.bf16.mxu0 %v2067_v2  ;;  %v1803_v29 = vld [vmem:[#allocation7 + $0x70] sm:$0xff]   ;;  %v1804_v30 = vld [vmem:[#allocation7 + $0x68] sm:$0xff]   ;;  %v1805_v31 = vld [vmem:[#allocation7 + $0x60] sm:$0xff]  }
  0x75   : > { %1551 = vmatprep.subr.bf16.mxu1 %v2067_v2  ;;  %v1806_v32 = vld [vmem:[#allocation7 + $0x58] sm:$0xff]   ;;  %v1807_v33 = vld [vmem:[#allocation7 + $0x50] sm:$0xff]   ;;  %v1808_v35 = vld [vmem:[#allocation7 + $0x48] sm:$0xff]  }
  0x76   : > { %v604_v34 = vld [vmem:[#allocation2 + $0x4] sm:$0x8]  ;;  %v1809_v38 = vld [vmem:[#allocation7 + $0x40] sm:$0xff]   ;;  %v1812_v42 = vld [vmem:[#allocation9 + $0xb8] sm:$0xff]  }
  0x77   : > { %1532 = vmatpush3.bf16.msra.mxu0 %v1787_v6  ;;  %v1815_v43 = vld [vmem:[#allocation9 + $0x38] sm:$0xff]   ;;  %v1813_v44 = vld [vmem:[#allocation9 + $0xb0] sm:$0xff]   ;;  %v1814_v46 = vld [vmem:[#allocation9 + $0xa8] sm:$0xff]  }
  0x78   : > { %1552 = vmatpush3.bf16.msra.mxu1 %v1788_v7  ;;  %1533 = vmatprep.subr.bf16.mxu0 %v2067_v2  ;;  %v1817_v45 = vld [vmem:[#allocation9 + $0x30] sm:$0xff]   ;;  %v1816_v47 = vld [vmem:[#allocation9 + $0xa0] sm:$0xff]   ;;  %v1818_v48 = vld [vmem:[#allocation9 + $0x98] sm:$0xff]  }
  0x79   : > { %1553 = vmatprep.subr.bf16.mxu1 %v2067_v2  ;;  %v389_v19 = vld [vmem:[#allocation2 + $0x8] sm:$0xf]  ;;  %v1800_v21 = vld [vmem:[#allocation2 + $0xc] ss:$0 sps:$4 sm:$0x33]   ;;  %v1819_v49 = vld [vmem:[#allocation9 + $0x28] sm:$0xff]  }
  0x7a   : > { %v1379_v20 = vcombine.low %v388_v17, %v389_v19  ;;  %v417_v25 = vrot.slane %v1800_v21, 2  ;;  %v1398_v36 = vcombine.low %v604_v34, %v389_v19  ;;  %v1811_v37 = vld [vmem:[#allocation2 + $0xc] ss:$0 sps:$4 sm:$0x77]   ;;  %v1820_v50 = vld [vmem:[#allocation9 + $0x90] sm:$0xff]   ;;  %v1821_v51 = vld [vmem:[#allocation9 + $0x20] sm:$0xff]  }
  0x7b   : > { %1534 = vmatpush3.bf16.msra.mxu0 %v1789_v8  ;;  %v630_v40 = vrot.slane %v1811_v37, 3  ;;  %v1822_v52 = vld [vmem:[#allocation9 + $0x88] sm:$0xff]   ;;  %v1823_v53 = vld [vmem:[#allocation9 + $0x18] sm:$0xff]   ;;  %v1824_v54 = vld [vmem:[#allocation9 + $0x80] sm:$0xff]  }
  0x7c   : > { %1554 = vmatpush3.bf16.msra.mxu1 %v1790_v9  ;;  %1535 = vmatprep.subr.bf16.mxu0 %v2067_v2  ;;  %v416_v24 = vrot.slane %v1379_v20, 2  ;;  %v629_v39 = vrot.slane %v1398_v36, 3  ;;  %v1825_v55 = vld [vmem:[#allocation9 + $0x10] sm:$0xff]   ;;  %v1826_v56 = vld [vmem:[#allocation9 + $0x8] sm:$0xff]   ;;  %v1827_v57 = vld [vmem:[#allocation9] sm:$0xff]  }
  0x7d   : > { %1555 = vmatprep.subr.bf16.mxu1 %v2067_v2  ;;  %v1408_v6 = vld [vmem:[%s2453_s2] ss:$0 sm:$0xff]  ;;  %v761_v19 = vld [vmem:[#allocation3 + $0x4] sm:$0xc]  ;;  %v1834_v20 = vld [vmem:[#allocation10 + $0x28] sm:$0xff]  }
  0x7e   : > { %v418_v27 = vsel %vm415_vm1, %v416_v24, %v417_v25  ;;  %v631_v41 = vsel %vm628_vm2, %v629_v39, %v630_v40  ;;  %v1836_v24 = vld [vmem:[#allocation10 + $0x20] sm:$0xff]   ;;  %v1842_v34 = vld [vmem:[#allocation10 + $0x8] sm:$0xff]   ;;  %v1839_v37 = vld [vmem:[#allocation9 + $0x58] sm:$0xff]  }
  0x7f   : > { %1536 = vmatpush3.bf16.msra.mxu0 %v1791_v10  ;;  %v1844_v36 = vld [vmem:[#allocation10] sm:$0xff]   ;;  %v1843_v40 = vld [vmem:[#allocation9 + $0x48] sm:$0xff]  }
  0x80   : > { %1556 = vmatpush3.bf16.msra.mxu1 %v1792_v11  ;;  %1537 = vmatprep.subr.bf16.mxu0 %v2067_v2  ;;  %v970_v39 = vld [vmem:[#allocation3 + $0x4] sm:$0x8] }
  0x81   : > { %1557 = vmatprep.subr.bf16.mxu1 %v2067_v2 }
  0x83   : > { %1538 = vmatpush3.bf16.msra.mxu0 %v1793_v14 }
  0x84   : > { %1558 = vmatpush3.bf16.msra.mxu1 %v1794_v15  ;;  %1539 = vmatprep.subr.bf16.mxu0 %v2067_v2 }
  0x85   : > { %1559 = vmatprep.subr.bf16.mxu1 %v2067_v2 }
  0x87   : > { %1540 = vmatpush3.bf16.msra.mxu0 %v1795_v16  ;;  %v1828_v16 = vld [vmem:[#allocation10 + $0x38] sm:$0xff]  }
  0x88   : > { %1560 = vmatpush3.bf16.msra.mxu1 %v1796_v18  ;;  %1541 = vmatprep.subr.bf16.mxu0 %v2067_v2  ;;  %v1832_v18 = vld [vmem:[#allocation10 + $0x30] sm:$0xff]  }
  0x89   : > { %1561 = vmatprep.subr.bf16.mxu1 %v2067_v2 }
  0x8b   : > { %1542 = vmatpush3.bf16.msra.mxu0 %v1797_v22 }
  0x8c   : > { %1562 = vmatpush3.bf16.msra.mxu1 %v1798_v23  ;;  %1567 = vmatprep.subr.bf16.mxu0 %v2067_v2 }
  0x8d   : > { %1587 = vmatprep.subr.bf16.mxu1 %v2067_v2 }
  0x8e   : > { %1544 = vmatmul.mubr.bf16.vlgmr.msra.gmra.mxu0 %v418_v27  ;;  %v1831_v27 = vld [vmem:[#allocation9 + $0x78] sm:$0xff]  }
  0x8f   : > { %1564 = vmatmul.mubr.bf16.vlgmr.msra.gmra.mxu1 %v2321_v28  ;;  %1568 = vmatpush3.bf16.msra.mxu0 %v1802_v26 }
  0x90   : > { %1569 = vmatprep.subr.bf16.mxu0 %v2067_v2  ;;  %1583 = vmatprep.mubr.msk.bf16.mxu0 %vm2068_vm0, %v2067_v2 }
  0x91   : > { %1603 = vmatprep.mubr.msk.bf16.mxu1 %vm2068_vm0, %v2067_v2  ;;  %1588 = vmatpush3.bf16.msra.mxu1 %v1815_v43  ;;  %v1845_v43 = vld [vmem:[#allocation9 + $0x40] sm:$0xff]  }
  0x92   : > { %1589 = vmatprep.subr.bf16.mxu1 %v2067_v2 }
  0x93   : > { %1570 = vmatpush3.bf16.msra.mxu0 %v1803_v29 }
  0x94   : > { %1571 = vmatprep.subr.bf16.mxu0 %v2067_v2 }
  0x95   : > { %1590 = vmatpush3.bf16.msra.mxu1 %v1817_v45 }
  0x96   : > { %1591 = vmatprep.subr.bf16.mxu1 %v2067_v2 }
  0x97   : > { %1572 = vmatpush3.bf16.msra.mxu0 %v1804_v30  ;;  %v1838_v30 = vld [vmem:[#allocation10 + $0x18] sm:$0xff]  }
  0x98   : > { %1573 = vmatprep.subr.bf16.mxu0 %v2067_v2 }
  0x99   : > { %1592 = vmatpush3.bf16.msra.mxu1 %v1819_v49 }
  0x9a   : > { %1593 = vmatprep.subr.bf16.mxu1 %v2067_v2 }
  0x9b   : > { %1574 = vmatpush3.bf16.msra.mxu0 %v1805_v31  ;;  %v1833_v31 = vld [vmem:[#allocation9 + $0x70] sm:$0xff]  }
  0x9c   : > { %1575 = vmatprep.subr.bf16.mxu0 %v2067_v2 }
  0x9d   : > { %1594 = vmatpush3.bf16.msra.mxu1 %v1821_v51 }
  0x9e   : > { %1595 = vmatprep.subr.bf16.mxu1 %v2067_v2 }
  0x9f   : > { %1576 = vmatpush3.bf16.msra.mxu0 %v1806_v32  ;;  %v1840_v32 = vld [vmem:[#allocation10 + $0x10] sm:$0xff]  }
  0xa0   : > { %1577 = vmatprep.subr.bf16.mxu0 %v2067_v2 }
  0xa1   : > { %1596 = vmatpush3.bf16.msra.mxu1 %v1823_v53 }
  0xa2   : > { %1597 = vmatprep.subr.bf16.mxu1 %v2067_v2 }
  0xa3   : > { %1578 = vmatpush3.bf16.msra.mxu0 %v1807_v33  ;;  %v1835_v33 = vld [vmem:[#allocation9 + $0x68] sm:$0xff]  }
  0xa4   : > { %1579 = vmatprep.subr.bf16.mxu0 %v2067_v2 }
  0xa5   : > { %1598 = vmatpush3.bf16.msra.mxu1 %v1825_v55 }
  0xa6   : > { %1599 = vmatprep.subr.bf16.mxu1 %v2067_v2 }
  0xa7   : > { %1580 = vmatpush3.bf16.msra.mxu0 %v1808_v35  ;;  %v1837_v35 = vld [vmem:[#allocation9 + $0x60] sm:$0xff]  }
  0xa8   : > { %1581 = vmatprep.subr.bf16.mxu0 %v2067_v2 }
  0xa9   : > { %1600 = vmatpush3.bf16.msra.mxu1 %v1826_v56 }
  0xaa   : > { %1601 = vmatprep.subr.bf16.mxu1 %v2067_v2 }
  0xab   : > { %1582 = vmatpush3.bf16.msra.mxu0 %v1809_v38  ;;  %v1841_v38 = vld [vmem:[#allocation9 + $0x50] sm:$0xff]  }
  0xac   : > { %1607 = vmatprep.subr.bf16.mxu0 %v2067_v2 }
  0xad   : > { %1602 = vmatpush3.bf16.msra.mxu1 %v1827_v57 }
  0xae   : > { %1584 = vmatmul.mubr.bf16.vlgmr.msra.gmra.mxu0 %v631_v41  ;;  %1627 = vmatprep.subr.bf16.mxu1 %v2067_v2 }
  0xaf   : > { %1623 = vmatprep.mubr.msk.bf16.mxu0 %vm2068_vm0, %v2067_v2  ;;  %1608 = vmatpush3.bf16.msra.mxu0 %v1812_v42 }
  0xb0   : > { %1609 = vmatprep.subr.bf16.mxu0 %v2067_v2 }
  0xb3   : > { %1610 = vmatpush3.bf16.msra.mxu0 %v1813_v44 }
  0xb4   : > { %1611 = vmatprep.subr.bf16.mxu0 %v2067_v2 }
  0xb7   : > { %1612 = vmatpush3.bf16.msra.mxu0 %v1814_v46 }
  0xb8   : > { %1613 = vmatprep.subr.bf16.mxu0 %v2067_v2 }
  0xbb   : > { %1614 = vmatpush3.bf16.msra.mxu0 %v1816_v47 }
  0xbc   : > { %1615 = vmatprep.subr.bf16.mxu0 %v2067_v2 }
  0xbf   : > { %1616 = vmatpush3.bf16.msra.mxu0 %v1818_v48 }
  0xc0   : > { %1617 = vmatprep.subr.bf16.mxu0 %v2067_v2 }
  0xc3   : > { %1618 = vmatpush3.bf16.msra.mxu0 %v1820_v50 }
  0xc4   : > { %1619 = vmatprep.subr.bf16.mxu0 %v2067_v2 }
  0xc7   : > { %1620 = vmatpush3.bf16.msra.mxu0 %v1822_v52 }
  0xc8   : > { %1621 = vmatprep.subr.bf16.mxu0 %v2067_v2 }
  0xcb   : > { %1622 = vmatpush3.bf16.msra.mxu0 %v1824_v54 }
  0xcc   : > { %1647 = vmatprep.subr.bf16.mxu0 %v2067_v2 }
 0x14e   : > { %v502_v58 = vpop.f32.mrf.mxu0 }
 0x14f   : > { %v597_v59 = vpop.f32.mrf.mxu1 }
 0x150   : > { %v1545_v60 = vpop.f32.mrf.mxu0  ;;  %v598_v3 = vadd.f32 %v597_v59, %v502_v58 }
 0x151   : > { %v1565_v61 = vpop.f32.mrf.mxu1  ;;  %v1439_v60 = vld [vmem:[%s2455_s4] ss:$0 sm:$0xff] }
 0x152   : > { %v505_v62 = vpop.f32.mrf.mxu0 }
 0x153   : > { %v600_v63 = vpop.f32.mrf.mxu1 }
 0x154   : > { %v1546_v0 = vpop.f32.mrf.mxu0  ;;  %v601_v8 = vadd.f32 %v600_v63, %v505_v62 }
 0x155   : > { %v1566_v1 = vpop.f32.mrf.mxu1 }
 0x16e   : > { %v715_v4 = vpop.f32.mrf.mxu0 }
 0x16f   : > { %v722_v5 = vadd.f32 %v715_v4, %v598_v3 }
 0x170   : > { %v1585_v7 = vpop.f32.mrf.mxu0 }
 0x171   : > { %v731_v10 = vadd.f32 %v1408_v6, %v722_v5 }
 0x172   : > { %v718_v9 = vpop.f32.mrf.mxu0 }
 0x173   : > { %v723_v11 = vadd.f32 %v718_v9, %v601_v8  ;;  %v733_v14 = vmax.f32 %v731_v10, 0.0 }
 0x174   : > { %v1586_v12 = vpop.f32.mrf.mxu0 }
 0x175   : > { %v732_v13 = vadd.f32 %v1408_v6, %v723_v11 }
 0x177   : > { %v734_v15 = vmax.f32 %v732_v13, 0.0 }
 0x179   : > { %v735_v17 = vpack.c.bf16 %v734_v15, %v733_v14 }
 0x17b   : > { %1463 = vst [vmem:[#allocation3 + $0x8] sm:$0xff] %v735_v17   ;;  %1624 = vmatmul.mubr.bf16.vlgmr.msra.gmra.mxu0 %v735_v17 }
 0x17c   : > { %1648 = vmatpush3.bf16.msra.mxu0 %v1828_v16  ;;  %1663 = vmatprep.mubr.msk.bf16.mxu0 %vm2068_vm0, %v2067_v2 }
 0x17d   : > { %1649 = vmatprep.subr.bf16.mxu0 %v2067_v2 }
 0x180   : > { %1650 = vmatpush3.bf16.msra.mxu0 %v1832_v18 }
 0x181   : > { %1651 = vmatprep.subr.bf16.mxu0 %v2067_v2 }
 0x182   : > { %v762_v21 = vld [vmem:[#allocation3 + $0x8] sm:$0xf]  ;;  %v1830_v23 = vld [vmem:[#allocation3 + $0xc] ss:$0 sps:$4 sm:$0x33]  }
 0x183   : > { %v1411_v22 = vcombine.low %v761_v19, %v762_v21  ;;  %v789_v26 = vrot.slane %v1830_v23, 2  ;;  %v1429_v41 = vcombine.low %v970_v39, %v762_v21  ;;  %v1847_v42 = vld [vmem:[#allocation3 + $0xc] ss:$0 sps:$4 sm:$0x77]  }
 0x184   : > { %1652 = vmatpush3.bf16.msra.mxu0 %v1834_v20  ;;  %v995_v45 = vrot.slane %v1847_v42, 3 }
 0x185   : > { %v788_v25 = vrot.slane %v1411_v22, 2  ;;  %1653 = vmatprep.subr.bf16.mxu0 %v2067_v2  ;;  %v994_v44 = vrot.slane %v1429_v41, 3 }
 0x187   : > { %v790_v29 = vsel %vm415_vm1, %v788_v25, %v789_v26  ;;  %v996_v46 = vsel %vm628_vm2, %v994_v44, %v995_v45 }
 0x188   : > { %1604 = vmatmul.mubr.bf16.vlgmr.msra.gmra.mxu1 %v790_v29  ;;  %1654 = vmatpush3.bf16.msra.mxu0 %v1836_v24 }
 0x189   : > { %1628 = vmatpush3.bf16.msra.mxu1 %v1831_v27  ;;  %1655 = vmatprep.subr.bf16.mxu0 %v2067_v2 }
 0x18a   : > { %1629 = vmatprep.subr.bf16.mxu1 %v2067_v2  ;;  %1643 = vmatprep.mubr.msk.bf16.mxu1 %vm2068_vm0, %v2067_v2 }
 0x18c   : > { %1656 = vmatpush3.bf16.msra.mxu0 %v1838_v30 }
 0x18d   : > { %1630 = vmatpush3.bf16.msra.mxu1 %v1833_v31  ;;  %1657 = vmatprep.subr.bf16.mxu0 %v2067_v2 }
 0x18e   : > { %1631 = vmatprep.subr.bf16.mxu1 %v2067_v2 }
 0x190   : > { %1658 = vmatpush3.bf16.msra.mxu0 %v1840_v32 }
 0x191   : > { %1632 = vmatpush3.bf16.msra.mxu1 %v1835_v33  ;;  %1659 = vmatprep.subr.bf16.mxu0 %v2067_v2 }
 0x192   : > { %1633 = vmatprep.subr.bf16.mxu1 %v2067_v2 }
 0x194   : > { %1660 = vmatpush3.bf16.msra.mxu0 %v1842_v34 }
 0x195   : > { %1634 = vmatpush3.bf16.msra.mxu1 %v1837_v35  ;;  %1661 = vmatprep.subr.bf16.mxu0 %v2067_v2 }
 0x196   : > { %1635 = vmatprep.subr.bf16.mxu1 %v2067_v2 }
 0x198   : > { %1662 = vmatpush3.bf16.msra.mxu0 %v1844_v36 }
 0x199   : > { %1636 = vmatpush3.bf16.msra.mxu1 %v1839_v37 }
 0x19a   : > { %1637 = vmatprep.subr.bf16.mxu1 %v2067_v2 }
 0x19b   : > { %1664 = vmatmul.mubr.bf16.vlgmr.msra.gmra.mxu0 %v2321_v28 }
 0x19d   : > { %1638 = vmatpush3.bf16.msra.mxu1 %v1841_v38 }
 0x19e   : > { %1639 = vmatprep.subr.bf16.mxu1 %v2067_v2 }
 0x1a1   : > { %1640 = vmatpush3.bf16.msra.mxu1 %v1843_v40 }
 0x1a2   : > { %1641 = vmatprep.subr.bf16.mxu1 %v2067_v2  ;;  %v1440_v2 = vld [vmem:[%s2457_s6] ss:$0 sm:$0xff] }
 0x1a5   : > { %1642 = vmatpush3.bf16.msra.mxu1 %v1845_v43 }
 0x1a8   : > { %1644 = vmatmul.mubr.bf16.vlgmr.msra.gmra.mxu1 %v996_v46 }
 0x23b   : > { %v963_v47 = vpop.f32.mrf.mxu0 }
 0x23d   : > { %v1625_v48 = vpop.f32.mrf.mxu0 }
 0x23f   : > { %v966_v28 = vpop.f32.mrf.mxu0 }
 0x241   : > { %v1626_v49 = vpop.f32.mrf.mxu0 }
 0x248   : > { %v874_v50 = vpop.f32.mrf.mxu1 }
 0x249   : > { %v964_v58 = vadd.f32 %v963_v47, %v874_v50 }
 0x24a   : > { %v1605_v51 = vpop.f32.mrf.mxu1 }
 0x24c   : > { %v877_v52 = vpop.f32.mrf.mxu1 }
 0x24d   : > { %v967_v63 = vadd.f32 %v966_v28, %v877_v52 }
 0x24e   : > { %v1606_v53 = vpop.f32.mrf.mxu1 }
 0x25b   : > { %v1205_v54 = vpop.f32.mrf.mxu0 }
 0x25c   : > { %v1206_v0 = vadd.f32 %v1440_v2, %v1205_v54 }
 0x25d   : > { %v1665_v55 = vpop.f32.mrf.mxu0 }
 0x25f   : > { %v1208_v56 = vpop.f32.mrf.mxu0 }
 0x260   : > { %v1209_v10 = vadd.f32 %v1440_v2, %v1208_v56 }
 0x261   : > { %v1666_v57 = vpop.f32.mrf.mxu0 }
 0x268   : > { %v1080_v59 = vpop.f32.mrf.mxu1 }
 0x269   : > { %v1087_v61 = vadd.f32 %v1080_v59, %v964_v58 }
 0x26a   : > { %v1645_v62 = vpop.f32.mrf.mxu1 }
 0x26b   : > { %v1096_v1 = vadd.f32 %v1439_v60, %v1087_v61 }
 0x26c   : > { %v1083_v3 = vpop.f32.mrf.mxu1 }
 0x26d   : > { %v1098_v4 = vmax.f32 %v1096_v1, 0.0  ;;  %v1088_v5 = vadd.f32 %v1083_v3, %v967_v63 }
 0x26e   : > { %v1646_v6 = vpop.f32.mrf.mxu1 }
 0x26f   : > { %v1212_v7 = vadd.f32 %v1206_v0, %v1098_v4  ;;  %v1097_v8 = vadd.f32 %v1439_v60, %v1088_v5 }
 0x271   : > { %v1214_v9 = vmax.f32 %v1212_v7, 0.0  ;;  %v1099_v11 = vmax.f32 %v1097_v8, 0.0 }
 0x273   : > { %1216 = vst [vmem:[%s2295_s7] sm:$0xff] %v1214_v9  ;;  %v1213_v12 = vadd.f32 %v1209_v10, %v1099_v11  ;;  %1221 = sbr.rel (%p1449_p1) target bundleno = 634 (0x27a), region = 72 }
 0x275   : > { %v1215_v13 = vmax.f32 %v1213_v12, 0.0 }
 0x277   : > { %1217 = vst [vmem:[%s2295_s7 + $0x8] sm:$0xff] %v1215_v13 }
 0x278   : > { %v1222_v14 = vld [vmem:[#allocation2 + $0xc] sm:$0xc]  ;;  %v1224_v15 = vld [vmem:[#allocation3 + $0xc] sm:$0xc] }
 0x279   : > { %1223 = vst [vmem:[#allocation2 + $0x4] sm:$0xc] %v1222_v14  ;;  %1225 = vst [vmem:[#allocation3 + $0x4] sm:$0xc] %v1224_v15 }
 0x27a PF: > { %s1451_s1 = sshll.u32 %s2042_s27, 1  ;;  %s1452_s10 = sshll.u32 %s2046_s28, 2 }
 0x27b   : > { %s1242_s18 = sshll.u32 %s2295_s7, 4  ;;  %s1239_s19 = sadd.s32 %s1452_s10, %s1451_s1  ;;  %s2393_s18 = int_to_ptr.vmem [resolvable:$true] %s1242_s18 }
 0x27c   : > { %s1453_s29 = sshll.u32 %s1239_s19, 7  ;;  %s2492_s17 = sld [smem:[#allocation25_spill]] }
 0x27d   : > { %s1227_s3 = scalar_lea.sflag [#allocation6], %s2276_s23  ;;  %s1954_s11 = scalar_lea.vmem %s2393_s18, 256 }
 0x27e   : > { %p1955_p4 = scmp.ne.s32.totalorder %s2393_s18, %s1954_s11  ;;  %s2069_s27 = smov [#allocation12]  }
 0x27f   : > { %s1958_s28 = sshll.u32 %s2069_s27, 4  ;;  %s1959_s28 = int_to_ptr.vmem [resolvable:$false] %s1958_s28 }
 0x280   : > { %p1956_p3 = pnand %p1955_p4, %p2236_p13  ;;  %s1960_s7 = scalar_lea.vmem %s1959_s28, 512 }
 0x281   : > { %p1961_p5 = scmp.lt.s32.totalorder %s2393_s18, %s1959_s28  ;;  %p1962_p7 = scmp.lt.s32.totalorder %s1960_s7, %s1954_s11 }
 0x282   : > { %s2398_s14 = scalar_lea.hbm %s2492_s17, %s1453_s29  ;;  %p1957_p2 = pneg %p1956_p3 }
 0x283   : > { %p1963_p6 = por %p1962_p7, %p1961_p5 }
 0x285   : > { %p1964_p11 = pnand %p1963_p6, %p1957_p2 }
 0x287   : > { %1967 = shalt.err (!%p1964_p11)
}
 0x288   : > { %s1968_s13 = scalar_lea.hbm %s2398_s14, 256  ;;  %s1972_s12 = scalar_lea.hbm %s2492_s17, 1024 }
 0x289   : > { %p1969_p9 = scmp.ne.s32.totalorder %s2398_s14, %s1968_s13  ;;  %p1973_p0 = scmp.lt.s32.totalorder %s2398_s14, %s2492_s17 }
 0x28a   : > { %p1974_p8 = scmp.lt.s32.totalorder %s1972_s12, %s1968_s13 }
 0x28b   : > { %p1970_p12 = pnand %p1969_p9, %p2236_p13 }
 0x28c   : > { %p1975_p1 = por %p1974_p8, %p1973_p0 }
 0x28d   : > { %p1971_p10 = pneg %p1970_p12 }
 0x28f   : > { %p1976_p4 = pnand %p1975_p1, %p1971_p10 }
 0x291   : > { %1979 = shalt.err (!%p1976_p4)
}
 0x292   : > { %s2070_s10 = smov 128   ;;  %s2071_s19 = smov 8  }
 0x293   : > { %1681 = dma.vmem_to_hbm [thread:$0]  (%p2236_p13), %s2393_s18, 256, %s2398_s14, %s1227_s3, %s2070_s10, %s2070_s10, %s2071_s19  }
 0x294 PF: > { %s2493_s29 = sld [smem:[#allocation17_spill]]  ;;  %p1708_p3 = scmp.ge.s32.totalorder %s2058_s8, 2 }
 0x295   : > { %s2494_s24 = sld [smem:[#allocation19_spill]] }
 0x29a   : > { %s1257_s22 = sand.u32 1, %s2493_s29  }
 0x29b   : > { %p2495_p2 = scmp.ne.s32.totalorder %s2494_s24, 0  ;;  %s1258_s11 = scalar_lea.sflag [#allocation6], %s1257_s22 }
 0x29d   : > { %p1698_p5 = pnand %p1708_p3, %p2495_p2 }
 0x29f   : > { %p1699_p7 = pneg %p1698_p5 }
 0x2a1   : > { %2025 = dma.done.wait (%p1699_p7), %s1258_s11, 256  }
 0x2a2   : > { %2027 = vsyncadd (%p1699_p7), %s1258_s11, 4294967040  ;;  %s25_s8 = sadd.s32 1, %s2058_s8   ;;  %s2496_s27 = sld [smem:[#allocation18_spill]] }
 0x2a3   : > { %p22_p6 = scmp.ge.s32.totalorder %s25_s8, 6   ;;  %s2497_s29 = sld [smem:[#allocation20_spill]] }
 0x2a4   : > { %s2498_s24 = smov %s2034_s25  ;;  %s2499_s25 = smov %s2038_s26 }
 0x2a5   : > { %s2500_s26 = smov %s2253_s5  ;;  %s2501_s28 = smov %s2054_s30 }
 0x2a6   : > { %s2502_s30 = smov %s2508_s20  ;;  %24 = sbr.rel (!%p22_p6) target bundleno = 14 (0xe), region = 113 }
 0x2ab   :  { %1263 = vsyncpa [#allocation5], 1 }
 0x2ac   :  { %1265 = vsyncpa [#allocation5 + $0x1], 1 }
 0x2ad   :  { %1266 = vsyncpa [#allocation8], 1 }
 0x2ae   :  { %1267 = vsyncpa [#allocation11], 1 }
 0x2af   :  { %1268 = vsyncpa [#allocation6], 1 }
 0x2b0   :  { %1270 = vsyncpa [#allocation6 + $0x1], 1 }

</bundles_post_ra>
